<compile_context>
chip_gen: v5e
topology: v5e:2x2
jax: 0.10.0
libtpu: 0.0.40
codegen_flags: <defaults>
</compile_context>

<pallas_src>
import functools
import math

import jax
import jax.numpy as jnp
from jax import lax
from jax.experimental import pallas as pl
from jax.experimental.pallas import tpu as pltpu


LANE_CHUNK = 128  # batch rows (lanes) processed per inner chunk iteration


# ----------------------------- Pallas kernel --------------------------------


def _kan_linear_kernel(xT_ref, grid_ref, recips_ref, w_ref, out_ref, act_ref,
                       *, spline_order, n_grid_pts, in_features, k_pad,
                       mxu_dtype):
    """One (transposed) batch-tile of the KANLinear forward.

    xT_ref     : (I, TB)      f32   batch tile, features on sublanes / batch on lanes
    grid_ref   : (I, NG)      f32   knots (NG = grid_size + 2*spline_order + 1)
    recips_ref : (I, S*NG)    f32   col (k-1)*NG + j = 1/(g[:, j+k] - g[:, j])
    w_ref      : (O, K_pad)   mxu   fused [base_weight | scaled_spline], zero-padded cols
    out_ref    : (O, TB)      f32   transposed output tile
    act_ref    : (K_pad, TB)  f32   VMEM scratch rows = [silu | B_0 .. B_{C-1} | zeros]
    """
    I = in_features
    NG = n_grid_pts
    TB = xT_ref.shape[1]
    n_rows = act_rows = None  # (placeholders for readability)
    n_rows = (1 + (NG - 1 - spline_order)) * I      # (1 + n_coef) * I
    n_chunks = TB // LANE_CHUNK

    # Zero the padded tail of the activation scratch every grid step (cheap;
    # robust even when the "parallel" batch axis is sharded across TensorCores,
    # where a per-core scratch may never see program_id == 0).
    if k_pad > n_rows:
        act_ref[pl.ds(n_rows, k_pad - n_rows), :] = jnp.zeros(
            (k_pad - n_rows, TB), jnp.float32)

    def chunk_body(c, carry):
        col = pl.multiple_of(c * LANE_CHUNK, LANE_CHUNK)
        x = xT_ref[:, pl.ds(col, LANE_CHUNK)]                       # (I, LC)

        # ---- order-0 bases: (x >= g[j]) & (x < g[j+1]) == ge[j] & ~ge[j+1] ----
        ge = [x >= grid_ref[:, j:j + 1] for j in range(NG)]
        bases = [(ge[j] & (~ge[j + 1])).astype(jnp.float32)
                 for j in range(NG - 1)]

        # ---- Cox-de Boor recursion (lane-dense, reciprocal denominators) ----
        # Knot / reciprocal columns are re-loaded per term (vld slot has slack);
        # this keeps the live vreg set to roughly the current/next basis lists.
        for k in range(1, spline_order + 1):
            row0 = (k - 1) * NG
            new_bases = []
            for j in range(len(bases) - 1):
                g_j = grid_ref[:, j:j + 1]                          # (I, 1)
                g_jk1 = grid_ref[:, j + k + 1:j + k + 2]            # (I, 1)
                r_l = recips_ref[:, row0 + j:row0 + j + 1]          # 1/(g[j+k]-g[j])
                r_r = recips_ref[:, row0 + j + 1:row0 + j + 2]      # 1/(g[j+k+1]-g[j+1])
                left = (x - g_j) * r_l * bases[j]
                right = (g_jk1 - x) * r_r * bases[j + 1]
                new_bases.append(left + right)
            bases = new_bases
        # len(bases) == n_coef == grid_size + spline_order

        # ---- write [silu | B_0 .. B_{C-1}] into the act scratch (static rows) ----
        silu_x = x * jax.nn.sigmoid(x)
        act_ref[pl.ds(0, I), pl.ds(col, LANE_CHUNK)] = silu_x
        for cidx, b in enumerate(bases):
            r0 = (1 + cidx) * I
            act_ref[pl.ds(r0, I), pl.ds(col, LANE_CHUNK)] = b
        return carry

    lax.fori_loop(0, n_chunks, chunk_body, 0)

    # ---- single fused MXU matmul: (O, K_pad) @ (K_pad, TB) -> (O, TB) ----
    out_ref[...] = jnp.dot(w_ref[...], act_ref[...].astype(mxu_dtype),
                           preferred_element_type=jnp.float32)


# ------------------------------ Wrapper --------------------------------------


def kan_linear_forward(x, grid, base_weight, spline_weight, spline_scaler,
                       *, grid_size, spline_order,
                       mxu_dtype=jnp.bfloat16, batch_tile=256):
    """x: (..., in_features) -> (..., out_features).  Elementwise spline math in
    f32; the single fused matmul runs in `mxu_dtype` with f32 accumulation."""
    in_features = base_weight.shape[1]
    out_features = base_weight.shape[0]
    n_coef = grid_size + spline_order
    n_grid_pts = grid_size + 2 * spline_order + 1
    n_rows = (1 + n_coef) * in_features
    k_pad = LANE_CHUNK * pl.cdiv(n_rows, LANE_CHUNK)          # 144 -> 256

    orig_shape = x.shape
    xb = x.reshape(-1, in_features).astype(jnp.float32)
    B = xb.shape[0]

    # ---- balanced, 128-aligned batch tiles (batch lives on the lane axis) ----
    n_tiles = max(1, pl.cdiv(B, batch_tile))
    TB = max(LANE_CHUNK, LANE_CHUNK * pl.cdiv(B, n_tiles * LANE_CHUNK))
    n_tiles = pl.cdiv(B, TB)
    B_pad = n_tiles * TB

    # Transposed input: (I, B_pad); zero-padded columns are sliced off below.
    xT = xb.T
    if B_pad != B:
        xT = jnp.pad(xT, ((0, 0), (0, B_pad - B)))

    grid_f = grid.astype(jnp.float32)                         # (I, NG)

    # Cox-de Boor denominator reciprocals: col (k-1)*NG + j = 1/(g[j+k]-g[j]),
    # zero-padded where j+k >= NG (never read).
    # TODO(synk): degenerate (repeated) knots would give inf/nan in torch but
    # yield 0 here; benign for the uniform grid this module constructs.
    recip_cols = []
    for k in range(1, spline_order + 1):
        diff = grid_f[:, k:] - grid_f[:, :-k]
        r = jnp.where(diff != 0, 1.0 / diff, 0.0)
        r = jnp.concatenate(
            [r, jnp.zeros((in_features, k), jnp.float32)], axis=1)
        recip_cols.append(r)
    recips = jnp.concatenate(recip_cols, axis=1)              # (I, S*NG)

    # Fused weight: columns = [base_weight | scaled_spline (c-major, i-minor)],
    # matching act rows [silu | B_0 .. B_{C-1}]; zero-padded to k_pad columns.
    scaled = spline_weight * spline_scaler[:, :, None]        # (O, I, C)
    spline_part = jnp.transpose(scaled, (0, 2, 1)).reshape(
        out_features, n_coef * in_features)                   # col c*I+i = scaled[o,i,c]
    w_fused = jnp.concatenate(
        [base_weight.astype(jnp.float32), spline_part], axis=1)
    w_fused = jnp.pad(w_fused, ((0, 0), (0, k_pad - n_rows))).astype(mxu_dtype)

    kernel = functools.partial(
        _kan_linear_kernel,
        spline_order=spline_order,
        n_grid_pts=n_grid_pts,
        in_features=in_features,
        k_pad=k_pad,
        mxu_dtype=mxu_dtype,
    )

    out_t = pl.pallas_call(
        kernel,
        out_shape=jax.ShapeDtypeStruct((out_features, B_pad), jnp.float32),
        grid_spec=pltpu.PrefetchScalarGridSpec(
            num_scalar_prefetch=0,
            grid=(n_tiles,),
            in_specs=[
                pl.BlockSpec((in_features, TB), lambda i: (0, i)),
                pl.BlockSpec((in_features, n_grid_pts), lambda i: (0, 0)),
                pl.BlockSpec((in_features, spline_order * n_grid_pts),
                             lambda i: (0, 0)),
                pl.BlockSpec((out_features, k_pad), lambda i: (0, 0)),
            ],
            out_specs=pl.BlockSpec((out_features, TB), lambda i: (0, i)),
            scratch_shapes=[pltpu.VMEM((k_pad, TB), jnp.float32)],
        ),
        compiler_params=pltpu.CompilerParams(
            dimension_semantics=("parallel",)),
    )(xT, grid_f, recips, w_fused)

    out = out_t[:, :B].T                                      # (B, O)
    return out.reshape(*orig_shape[:-1], out_features)


# --------------------------- Pure-JAX reference -------------------------------


def _b_splines_ref(x, grid, spline_order):
    # x: (B, I), grid: (I, NG)
    xe = x[:, :, None]
    g = grid[None, :, :]
    bases = ((xe >= g[:, :, :-1]) & (xe < g[:, :, 1:])).astype(x.dtype)
    for k in range(1, spline_order + 1):
        bases = ((xe - g[:, :, : -(k + 1)])
                 / (g[:, :, k:-1] - g[:, :, : -(k + 1)]) * bases[:, :, :-1]
                 + (g[:, :, k + 1:] - xe)
                 / (g[:, :, k + 1:] - g[:, :, 1:-k]) * bases[:, :, 1:])
    return bases


def kan_linear_ref(x, grid, base_weight, spline_weight, spline_scaler,
                   *, grid_size, spline_order):
    in_features = base_weight.shape[1]
    out_features = base_weight.shape[0]
    orig_shape = x.shape
    xb = x.reshape(-1, in_features)
    silu = xb * jax.nn.sigmoid(xb)
    base_out = silu @ base_weight.T
    bases = _b_splines_ref(xb, grid, spline_order)                    # (B, I, C)
    scaled = spline_weight * spline_scaler[:, :, None]                # (O, I, C)
    spline_out = bases.reshape(xb.shape[0], -1) @ scaled.reshape(out_features, -1).T
    return (base_out + spline_out).reshape(*orig_shape[:-1], out_features)


# --------------------------------- Main ---------------------------------------


if __name__ == "__main__":
    # Hyperparameters (match module defaults)
    in_features = 16
    out_features = 32
    grid_size = 5
    spline_order = 3
    scale_spline = 1.0
    grid_range = (-1.0, 1.0)

    n_coef = grid_size + spline_order
    n_grid_pts = grid_size + 2 * spline_order + 1

    key = jax.random.PRNGKey(0)
    k_x, k_x2, k_x3, k_bw, k_sw = jax.random.split(key, 5)

    # Deterministic synthetic parameter init (shapes as in __init__; not a
    # checkpoint load).  base_weight ~ xavier-uniform, spline_weight small.
    h = (grid_range[1] - grid_range[0]) / grid_size
    grid = (jnp.arange(-spline_order, grid_size + spline_order + 1,
                       dtype=jnp.float32) * h + grid_range[0])
    grid = jnp.broadcast_to(grid, (in_features, n_grid_pts))          # (I, NG)

    xav = math.sqrt(6.0 / (in_features + out_features))
    base_weight = jax.random.uniform(k_bw, (out_features, in_features),
                                     minval=-xav, maxval=xav, dtype=jnp.float32)
    spline_weight = 0.1 * jax.random.normal(
        k_sw, (out_features, in_features, n_coef), dtype=jnp.float32)
    spline_scaler = jnp.full((out_features, in_features), scale_spline,
                             dtype=jnp.float32)
    # TODO(synk): the torch curve2coeff (lstsq-based) init is a training-time
    # nicety only; forward semantics don't depend on it, so plain random init.

    # Input: x of shape (2, 4, 16) -> flattened batch B=8, in_features=16.
    x = jax.random.uniform(k_x, (2, 4, in_features),
                           minval=-0.95, maxval=0.95, dtype=jnp.float32)

    ref = kan_linear_ref(x, grid, base_weight, spline_weight, spline_scaler,
                         grid_size=grid_size, spline_order=spline_order)

    # 1) f32 MXU path: exact semantics check vs. pure-JAX reference.
    out_f32 = kan_linear_forward(
        x, grid, base_weight, spline_weight, spline_scaler,
        grid_size=grid_size, spline_order=spline_order, mxu_dtype=jnp.float32)
    out_f32 = jax.block_until_ready(out_f32)
    assert out_f32.shape == (2, 4, out_features), out_f32.shape
    assert jnp.allclose(out_f32, ref, atol=1e-5, rtol=1e-5), float(
        jnp.max(jnp.abs(out_f32 - ref)))

    # 2) bf16 MXU path (default): matmul operands in bf16, f32 accumulate.
    out_bf16 = kan_linear_forward(
        x, grid, base_weight, spline_weight, spline_scaler,
        grid_size=grid_size, spline_order=spline_order, mxu_dtype=jnp.bfloat16)
    out_bf16 = jax.block_until_ready(out_bf16)
    assert jnp.allclose(out_bf16, ref, atol=2e-2, rtol=2e-2), float(
        jnp.max(jnp.abs(out_bf16 - ref)))

    # 3) Ragged batch (exercises padding path): B=5, padded to a 128-lane tile.
    x2 = jax.random.uniform(k_x2, (5, in_features),
                            minval=-0.95, maxval=0.95, dtype=jnp.float32)
    out2 = kan_linear_forward(
        x2, grid, base_weight, spline_weight, spline_scaler,
        grid_size=grid_size, spline_order=spline_order, mxu_dtype=jnp.float32)
    out2 = jax.block_until_ready(out2)
    ref2 = kan_linear_ref(x2, grid, base_weight, spline_weight, spline_scaler,
                          grid_size=grid_size, spline_order=spline_order)
    assert out2.shape == (5, out_features), out2.shape
    assert jnp.allclose(out2, ref2, atol=1e-5, rtol=1e-5), float(
        jnp.max(jnp.abs(out2 - ref2)))

    # 4) Multi-tile batch (exercises grid loop + lane-chunk loop): B=300.
    x3 = jax.random.uniform(k_x3, (300, in_features),
                            minval=-0.95, maxval=0.95, dtype=jnp.float32)
    out3 = kan_linear_forward(
        x3, grid, base_weight, spline_weight, spline_scaler,
        grid_size=grid_size, spline_order=spline_order, mxu_dtype=jnp.float32)
    out3 = jax.block_until_ready(out3)
    ref3 = kan_linear_ref(x3, grid, base_weight, spline_weight, spline_scaler,
                          grid_size=grid_size, spline_order=spline_order)
    assert out3.shape == (300, out_features), out3.shape
    assert jnp.allclose(out3, ref3, atol=1e-5, rtol=1e-5), float(
        jnp.max(jnp.abs(out3 - ref3)))

    print("KERNEL_OK")
</pallas_src>

<mosaic_0001>
module attributes {stable_mosaic.version = 11 : i64} {
  func.func @_kan_linear_kernel(%arg0: i32, %arg1: memref<16x128xf32, #tpu.memory_space<vmem>>, %arg2: memref<16x12xf32, #tpu.memory_space<vmem>>, %arg3: memref<16x36xf32, #tpu.memory_space<vmem>>, %arg4: memref<32x256xf32, #tpu.memory_space<vmem>>, %arg5: memref<32x128xf32, #tpu.memory_space<vmem>>, %arg6: memref<256x128xf32, #tpu.memory_space<vmem>>) attributes {dimension_semantics = [#tpu.dimension_semantics<parallel>], iteration_bounds = array<i64: 1>, scalar_prefetch = 0 : i64, scratch_operands = 1 : i64, tpu.core_type = #tpu.core_type<tc>, window_params = [{transform_indices = @transform_0, window_bounds = array<i64: 16, 128>}, {pipeline_mode = #tpu.pipeline_mode<synchronous>, transform_indices = @transform_1, window_bounds = array<i64: 16, 12>}, {pipeline_mode = #tpu.pipeline_mode<synchronous>, transform_indices = @transform_2, window_bounds = array<i64: 16, 36>}, {pipeline_mode = #tpu.pipeline_mode<synchronous>, transform_indices = @transform_3, window_bounds = array<i64: 32, 256>}, {transform_indices = @transform_4, window_bounds = array<i64: 32, 128>}]} {
    %cst = arith.constant 0.000000e+00 : f32
    %0 = vector.broadcast %cst : f32 to vector<112x128xf32>
    %c144 = arith.constant 144 : index
    %c0 = arith.constant 0 : index
    %1 = vector.load %arg6[%c144, %c0] : memref<256x128xf32, #tpu.memory_space<vmem>>, vector<112x128xf32>
    tpu.vector_store %arg6[%c144, %c0], %0 {strides = array<i32>} : memref<256x128xf32, #tpu.memory_space<vmem>>, vector<112x128xf32>,
    %c0_i32 = arith.constant 0 : i32
    %c128_i32 = arith.constant 128 : i32
    %2 = arith.muli %c0_i32, %c128_i32 : i32
    %3 = tpu.assume_multiple %2, 128 : i32
    %c0_0 = arith.constant 0 : index
    %4 = arith.index_cast %3 : i32 to index
    %5 = vector.load %arg1[%c0_0, %4] : memref<16x128xf32, #tpu.memory_space<vmem>>, vector<16x128xf32>
    %c0_1 = arith.constant 0 : index
    %c0_2 = arith.constant 0 : index
    %6 = vector.load %arg2[%c0_1, %c0_2] : memref<16x12xf32, #tpu.memory_space<vmem>>, vector<16x1xf32>
    %7 = vector.broadcast %6 : vector<16x1xf32> to vector<16x128xf32>
    %8 = arith.cmpf oge, %5, %7 : vector<16x128xf32>
    %c0_3 = arith.constant 0 : index
    %c1 = arith.constant 1 : index
    %9 = vector.load %arg2[%c0_3, %c1] : memref<16x12xf32, #tpu.memory_space<vmem>>, vector<16x1xf32>
    %10 = vector.broadcast %9 : vector<16x1xf32> to vector<16x128xf32>
    %11 = arith.cmpf oge, %5, %10 : vector<16x128xf32>
    %c0_4 = arith.constant 0 : index
    %c2 = arith.constant 2 : index
    %12 = vector.load %arg2[%c0_4, %c2] : memref<16x12xf32, #tpu.memory_space<vmem>>, vector<16x1xf32>
    %13 = vector.broadcast %12 : vector<16x1xf32> to vector<16x128xf32>
    %14 = arith.cmpf oge, %5, %13 : vector<16x128xf32>
    %c0_5 = arith.constant 0 : index
    %c3 = arith.constant 3 : index
    %15 = vector.load %arg2[%c0_5, %c3] : memref<16x12xf32, #tpu.memory_space<vmem>>, vector<16x1xf32>
    %16 = vector.broadcast %15 : vector<16x1xf32> to vector<16x128xf32>
    %17 = arith.cmpf oge, %5, %16 : vector<16x128xf32>
    %c0_6 = arith.constant 0 : index
    %c4 = arith.constant 4 : index
    %18 = vector.load %arg2[%c0_6, %c4] : memref<16x12xf32, #tpu.memory_space<vmem>>, vector<16x1xf32>
    %19 = vector.broadcast %18 : vector<16x1xf32> to vector<16x128xf32>
    %20 = arith.cmpf oge, %5, %19 : vector<16x128xf32>
    %c0_7 = arith.constant 0 : index
    %c5 = arith.constant 5 : index
    %21 = vector.load %arg2[%c0_7, %c5] : memref<16x12xf32, #tpu.memory_space<vmem>>, vector<16x1xf32>
    %22 = vector.broadcast %21 : vector<16x1xf32> to vector<16x128xf32>
    %23 = arith.cmpf oge, %5, %22 : vector<16x128xf32>
    %c0_8 = arith.constant 0 : index
    %c6 = arith.constant 6 : index
    %24 = vector.load %arg2[%c0_8, %c6] : memref<16x12xf32, #tpu.memory_space<vmem>>, vector<16x1xf32>
    %25 = vector.broadcast %24 : vector<16x1xf32> to vector<16x128xf32>
    %26 = arith.cmpf oge, %5, %25 : vector<16x128xf32>
    %c0_9 = arith.constant 0 : index
    %c7 = arith.constant 7 : index
    %27 = vector.load %arg2[%c0_9, %c7] : memref<16x12xf32, #tpu.memory_space<vmem>>, vector<16x1xf32>
    %28 = vector.broadcast %27 : vector<16x1xf32> to vector<16x128xf32>
    %29 = arith.cmpf oge, %5, %28 : vector<16x128xf32>
    %c0_10 = arith.constant 0 : index
    %c8 = arith.constant 8 : index
    %30 = vector.load %arg2[%c0_10, %c8] : memref<16x12xf32, #tpu.memory_space<vmem>>, vector<16x1xf32>
    %31 = vector.broadcast %30 : vector<16x1xf32> to vector<16x128xf32>
    %32 = arith.cmpf oge, %5, %31 : vector<16x128xf32>
    %c0_11 = arith.constant 0 : index
    %c9 = arith.constant 9 : index
    %33 = vector.load %arg2[%c0_11, %c9] : memref<16x12xf32, #tpu.memory_space<vmem>>, vector<16x1xf32>
    %34 = vector.broadcast %33 : vector<16x1xf32> to vector<16x128xf32>
    %35 = arith.cmpf oge, %5, %34 : vector<16x128xf32>
    %c0_12 = arith.constant 0 : index
    %c10 = arith.constant 10 : index
    %36 = vector.load %arg2[%c0_12, %c10] : memref<16x12xf32, #tpu.memory_space<vmem>>, vector<16x1xf32>
    %37 = vector.broadcast %36 : vector<16x1xf32> to vector<16x128xf32>
    %38 = arith.cmpf oge, %5, %37 : vector<16x128xf32>
    %c0_13 = arith.constant 0 : index
    %c11 = arith.constant 11 : index
    %39 = vector.load %arg2[%c0_13, %c11] : memref<16x12xf32, #tpu.memory_space<vmem>>, vector<16x1xf32>
    %40 = vector.broadcast %39 : vector<16x1xf32> to vector<16x128xf32>
    %41 = arith.cmpf oge, %5, %40 : vector<16x128xf32>
    %cst_14 = arith.constant dense<true> : vector<16x128xi1>
    %42 = arith.xori %11, %cst_14 : vector<16x128xi1>
    %43 = arith.andi %8, %42 : vector<16x128xi1>
    %44 = arith.extui %43 : vector<16x128xi1> to vector<16x128xi32>
    %45 = arith.sitofp %44 : vector<16x128xi32> to vector<16x128xf32>
    %cst_15 = arith.constant dense<true> : vector<16x128xi1>
    %46 = arith.xori %14, %cst_15 : vector<16x128xi1>
    %47 = arith.andi %11, %46 : vector<16x128xi1>
    %48 = arith.extui %47 : vector<16x128xi1> to vector<16x128xi32>
    %49 = arith.sitofp %48 : vector<16x128xi32> to vector<16x128xf32>
    %cst_16 = arith.constant dense<true> : vector<16x128xi1>
    %50 = arith.xori %17, %cst_16 : vector<16x128xi1>
    %51 = arith.andi %14, %50 : vector<16x128xi1>
    %52 = arith.extui %51 : vector<16x128xi1> to vector<16x128xi32>
    %53 = arith.sitofp %52 : vector<16x128xi32> to vector<16x128xf32>
    %cst_17 = arith.constant dense<true> : vector<16x128xi1>
    %54 = arith.xori %20, %cst_17 : vector<16x128xi1>
    %55 = arith.andi %17, %54 : vector<16x128xi1>
    %56 = arith.extui %55 : vector<16x128xi1> to vector<16x128xi32>
    %57 = arith.sitofp %56 : vector<16x128xi32> to vector<16x128xf32>
    %cst_18 = arith.constant dense<true> : vector<16x128xi1>
    %58 = arith.xori %23, %cst_18 : vector<16x128xi1>
    %59 = arith.andi %20, %58 : vector<16x128xi1>
    %60 = arith.extui %59 : vector<16x128xi1> to vector<16x128xi32>
    %61 = arith.sitofp %60 : vector<16x128xi32> to vector<16x128xf32>
    %cst_19 = arith.constant dense<true> : vector<16x128xi1>
    %62 = arith.xori %26, %cst_19 : vector<16x128xi1>
    %63 = arith.andi %23, %62 : vector<16x128xi1>
    %64 = arith.extui %63 : vector<16x128xi1> to vector<16x128xi32>
    %65 = arith.sitofp %64 : vector<16x128xi32> to vector<16x128xf32>
    %cst_20 = arith.constant dense<true> : vector<16x128xi1>
    %66 = arith.xori %29, %cst_20 : vector<16x128xi1>
    %67 = arith.andi %26, %66 : vector<16x128xi1>
    %68 = arith.extui %67 : vector<16x128xi1> to vector<16x128xi32>
    %69 = arith.sitofp %68 : vector<16x128xi32> to vector<16x128xf32>
    %cst_21 = arith.constant dense<true> : vector<16x128xi1>
    %70 = arith.xori %32, %cst_21 : vector<16x128xi1>
    %71 = arith.andi %29, %70 : vector<16x128xi1>
    %72 = arith.extui %71 : vector<16x128xi1> to vector<16x128xi32>
    %73 = arith.sitofp %72 : vector<16x128xi32> to vector<16x128xf32>
    %cst_22 = arith.constant dense<true> : vector<16x128xi1>
    %74 = arith.xori %35, %cst_22 : vector<16x128xi1>
    %75 = arith.andi %32, %74 : vector<16x128xi1>
    %76 = arith.extui %75 : vector<16x128xi1> to vector<16x128xi32>
    %77 = arith.sitofp %76 : vector<16x128xi32> to vector<16x128xf32>
    %cst_23 = arith.constant dense<true> : vector<16x128xi1>
    %78 = arith.xori %38, %cst_23 : vector<16x128xi1>
    %79 = arith.andi %35, %78 : vector<16x128xi1>
    %80 = arith.extui %79 : vector<16x128xi1> to vector<16x128xi32>
    %81 = arith.sitofp %80 : vector<16x128xi32> to vector<16x128xf32>
    %cst_24 = arith.constant dense<true> : vector<16x128xi1>
    %82 = arith.xori %41, %cst_24 : vector<16x128xi1>
    %83 = arith.andi %38, %82 : vector<16x128xi1>
    %84 = arith.extui %83 : vector<16x128xi1> to vector<16x128xi32>
    %85 = arith.sitofp %84 : vector<16x128xi32> to vector<16x128xf32>
    %c0_25 = arith.constant 0 : index
    %c0_26 = arith.constant 0 : index
    %86 = vector.load %arg2[%c0_25, %c0_26] : memref<16x12xf32, #tpu.memory_space<vmem>>, vector<16x1xf32>
    %c0_27 = arith.constant 0 : index
    %c2_28 = arith.constant 2 : index
    %87 = vector.load %arg2[%c0_27, %c2_28] : memref<16x12xf32, #tpu.memory_space<vmem>>, vector<16x1xf32>
    %c0_29 = arith.constant 0 : index
    %c0_30 = arith.constant 0 : index
    %88 = vector.load %arg3[%c0_29, %c0_30] : memref<16x36xf32, #tpu.memory_space<vmem>>, vector<16x1xf32>
    %c0_31 = arith.constant 0 : index
    %c1_32 = arith.constant 1 : index
    %89 = vector.load %arg3[%c0_31, %c1_32] : memref<16x36xf32, #tpu.memory_space<vmem>>, vector<16x1xf32>
    %90 = vector.broadcast %86 : vector<16x1xf32> to vector<16x128xf32>
    %91 = arith.subf %5, %90 : vector<16x128xf32>
    %92 = vector.broadcast %88 : vector<16x1xf32> to vector<16x128xf32>
    %93 = arith.mulf %91, %92 : vector<16x128xf32>
    %94 = arith.mulf %93, %45 : vector<16x128xf32>
    %95 = vector.broadcast %87 : vector<16x1xf32> to vector<16x128xf32>
    %96 = arith.subf %95, %5 : vector<16x128xf32>
    %97 = vector.broadcast %89 : vector<16x1xf32> to vector<16x128xf32>
    %98 = arith.mulf %96, %97 : vector<16x128xf32>
    %99 = arith.mulf %98, %49 : vector<16x128xf32>
    %100 = arith.addf %94, %99 : vector<16x128xf32>
    %c0_33 = arith.constant 0 : index
    %c1_34 = arith.constant 1 : index
    %101 = vector.load %arg2[%c0_33, %c1_34] : memref<16x12xf32, #tpu.memory_space<vmem>>, vector<16x1xf32>
    %c0_35 = arith.constant 0 : index
    %c3_36 = arith.constant 3 : index
    %102 = vector.load %arg2[%c0_35, %c3_36] : memref<16x12xf32, #tpu.memory_space<vmem>>, vector<16x1xf32>
    %c0_37 = arith.constant 0 : index
    %c1_38 = arith.constant 1 : index
    %103 = vector.load %arg3[%c0_37, %c1_38] : memref<16x36xf32, #tpu.memory_space<vmem>>, vector<16x1xf32>
    %c0_39 = arith.constant 0 : index
    %c2_40 = arith.constant 2 : index
    %104 = vector.load %arg3[%c0_39, %c2_40] : memref<16x36xf32, #tpu.memory_space<vmem>>, vector<16x1xf32>
    %105 = vector.broadcast %101 : vector<16x1xf32> to vector<16x128xf32>
    %106 = arith.subf %5, %105 : vector<16x128xf32>
    %107 = vector.broadcast %103 : vector<16x1xf32> to vector<16x128xf32>
    %108 = arith.mulf %106, %107 : vector<16x128xf32>
    %109 = arith.mulf %108, %49 : vector<16x128xf32>
    %110 = vector.broadcast %102 : vector<16x1xf32> to vector<16x128xf32>
    %111 = arith.subf %110, %5 : vector<16x128xf32>
    %112 = vector.broadcast %104 : vector<16x1xf32> to vector<16x128xf32>
    %113 = arith.mulf %111, %112 : vector<16x128xf32>
    %114 = arith.mulf %113, %53 : vector<16x128xf32>
    %115 = arith.addf %109, %114 : vector<16x128xf32>
    %c0_41 = arith.constant 0 : index
    %c2_42 = arith.constant 2 : index
    %116 = vector.load %arg2[%c0_41, %c2_42] : memref<16x12xf32, #tpu.memory_space<vmem>>, vector<16x1xf32>
    %c0_43 = arith.constant 0 : index
    %c4_44 = arith.constant 4 : index
    %117 = vector.load %arg2[%c0_43, %c4_44] : memref<16x12xf32, #tpu.memory_space<vmem>>, vector<16x1xf32>
    %c0_45 = arith.constant 0 : index
    %c2_46 = arith.constant 2 : index
    %118 = vector.load %arg3[%c0_45, %c2_46] : memref<16x36xf32, #tpu.memory_space<vmem>>, vector<16x1xf32>
    %c0_47 = arith.constant 0 : index
    %c3_48 = arith.constant 3 : index
    %119 = vector.load %arg3[%c0_47, %c3_48] : memref<16x36xf32, #tpu.memory_space<vmem>>, vector<16x1xf32>
    %120 = vector.broadcast %116 : vector<16x1xf32> to vector<16x128xf32>
    %121 = arith.subf %5, %120 : vector<16x128xf32>
    %122 = vector.broadcast %118 : vector<16x1xf32> to vector<16x128xf32>
    %123 = arith.mulf %121, %122 : vector<16x128xf32>
    %124 = arith.mulf %123, %53 : vector<16x128xf32>
    %125 = vector.broadcast %117 : vector<16x1xf32> to vector<16x128xf32>
    %126 = arith.subf %125, %5 : vector<16x128xf32>
    %127 = vector.broadcast %119 : vector<16x1xf32> to vector<16x128xf32>
    %128 = arith.mulf %126, %127 : vector<16x128xf32>
    %129 = arith.mulf %128, %57 : vector<16x128xf32>
    %130 = arith.addf %124, %129 : vector<16x128xf32>
    %c0_49 = arith.constant 0 : index
    %c3_50 = arith.constant 3 : index
    %131 = vector.load %arg2[%c0_49, %c3_50] : memref<16x12xf32, #tpu.memory_space<vmem>>, vector<16x1xf32>
    %c0_51 = arith.constant 0 : index
    %c5_52 = arith.constant 5 : index
    %132 = vector.load %arg2[%c0_51, %c5_52] : memref<16x12xf32, #tpu.memory_space<vmem>>, vector<16x1xf32>
    %c0_53 = arith.constant 0 : index
    %c3_54 = arith.constant 3 : index
    %133 = vector.load %arg3[%c0_53, %c3_54] : memref<16x36xf32, #tpu.memory_space<vmem>>, vector<16x1xf32>
    %c0_55 = arith.constant 0 : index
    %c4_56 = arith.constant 4 : index
    %134 = vector.load %arg3[%c0_55, %c4_56] : memref<16x36xf32, #tpu.memory_space<vmem>>, vector<16x1xf32>
    %135 = vector.broadcast %131 : vector<16x1xf32> to vector<16x128xf32>
    %136 = arith.subf %5, %135 : vector<16x128xf32>
    %137 = vector.broadcast %133 : vector<16x1xf32> to vector<16x128xf32>
    %138 = arith.mulf %136, %137 : vector<16x128xf32>
    %139 = arith.mulf %138, %57 : vector<16x128xf32>
    %140 = vector.broadcast %132 : vector<16x1xf32> to vector<16x128xf32>
    %141 = arith.subf %140, %5 : vector<16x128xf32>
    %142 = vector.broadcast %134 : vector<16x1xf32> to vector<16x128xf32>
    %143 = arith.mulf %141, %142 : vector<16x128xf32>
    %144 = arith.mulf %143, %61 : vector<16x128xf32>
    %145 = arith.addf %139, %144 : vector<16x128xf32>
    %c0_57 = arith.constant 0 : index
    %c4_58 = arith.constant 4 : index
    %146 = vector.load %arg2[%c0_57, %c4_58] : memref<16x12xf32, #tpu.memory_space<vmem>>, vector<16x1xf32>
    %c0_59 = arith.constant 0 : index
    %c6_60 = arith.constant 6 : index
    %147 = vector.load %arg2[%c0_59, %c6_60] : memref<16x12xf32, #tpu.memory_space<vmem>>, vector<16x1xf32>
    %c0_61 = arith.constant 0 : index
    %c4_62 = arith.constant 4 : index
    %148 = vector.load %arg3[%c0_61, %c4_62] : memref<16x36xf32, #tpu.memory_space<vmem>>, vector<16x1xf32>
    %c0_63 = arith.constant 0 : index
    %c5_64 = arith.constant 5 : index
    %149 = vector.load %arg3[%c0_63, %c5_64] : memref<16x36xf32, #tpu.memory_space<vmem>>, vector<16x1xf32>
    %150 = vector.broadcast %146 : vector<16x1xf32> to vector<16x128xf32>
    %151 = arith.subf %5, %150 : vector<16x128xf32>
    %152 = vector.broadcast %148 : vector<16x1xf32> to vector<16x128xf32>
    %153 = arith.mulf %151, %152 : vector<16x128xf32>
    %154 = arith.mulf %153, %61 : vector<16x128xf32>
    %155 = vector.broadcast %147 : vector<16x1xf32> to vector<16x128xf32>
    %156 = arith.subf %155, %5 : vector<16x128xf32>
    %157 = vector.broadcast %149 : vector<16x1xf32> to vector<16x128xf32>
    %158 = arith.mulf %156, %157 : vector<16x128xf32>
    %159 = arith.mulf %158, %65 : vector<16x128xf32>
    %160 = arith.addf %154, %159 : vector<16x128xf32>
    %c0_65 = arith.constant 0 : index
    %c5_66 = arith.constant 5 : index
    %161 = vector.load %arg2[%c0_65, %c5_66] : memref<16x12xf32, #tpu.memory_space<vmem>>, vector<16x1xf32>
    %c0_67 = arith.constant 0 : index
    %c7_68 = arith.constant 7 : index
    %162 = vector.load %arg2[%c0_67, %c7_68] : memref<16x12xf32, #tpu.memory_space<vmem>>, vector<16x1xf32>
    %c0_69 = arith.constant 0 : index
    %c5_70 = arith.constant 5 : index
    %163 = vector.load %arg3[%c0_69, %c5_70] : memref<16x36xf32, #tpu.memory_space<vmem>>, vector<16x1xf32>
    %c0_71 = arith.constant 0 : index
    %c6_72 = arith.constant 6 : index
    %164 = vector.load %arg3[%c0_71, %c6_72] : memref<16x36xf32, #tpu.memory_space<vmem>>, vector<16x1xf32>
    %165 = vector.broadcast %161 : vector<16x1xf32> to vector<16x128xf32>
    %166 = arith.subf %5, %165 : vector<16x128xf32>
    %167 = vector.broadcast %163 : vector<16x1xf32> to vector<16x128xf32>
    %168 = arith.mulf %166, %167 : vector<16x128xf32>
    %169 = arith.mulf %168, %65 : vector<16x128xf32>
    %170 = vector.broadcast %162 : vector<16x1xf32> to vector<16x128xf32>
    %171 = arith.subf %170, %5 : vector<16x128xf32>
    %172 = vector.broadcast %164 : vector<16x1xf32> to vector<16x128xf32>
    %173 = arith.mulf %171, %172 : vector<16x128xf32>
    %174 = arith.mulf %173, %69 : vector<16x128xf32>
    %175 = arith.addf %169, %174 : vector<16x128xf32>
    %c0_73 = arith.constant 0 : index
    %c6_74 = arith.constant 6 : index
    %176 = vector.load %arg2[%c0_73, %c6_74] : memref<16x12xf32, #tpu.memory_space<vmem>>, vector<16x1xf32>
    %c0_75 = arith.constant 0 : index
    %c8_76 = arith.constant 8 : index
    %177 = vector.load %arg2[%c0_75, %c8_76] : memref<16x12xf32, #tpu.memory_space<vmem>>, vector<16x1xf32>
    %c0_77 = arith.constant 0 : index
    %c6_78 = arith.constant 6 : index
    %178 = vector.load %arg3[%c0_77, %c6_78] : memref<16x36xf32, #tpu.memory_space<vmem>>, vector<16x1xf32>
    %c0_79 = arith.constant 0 : index
    %c7_80 = arith.constant 7 : index
    %179 = vector.load %arg3[%c0_79, %c7_80] : memref<16x36xf32, #tpu.memory_space<vmem>>, vector<16x1xf32>
    %180 = vector.broadcast %176 : vector<16x1xf32> to vector<16x128xf32>
    %181 = arith.subf %5, %180 : vector<16x128xf32>
    %182 = vector.broadcast %178 : vector<16x1xf32> to vector<16x128xf32>
    %183 = arith.mulf %181, %182 : vector<16x128xf32>
    %184 = arith.mulf %183, %69 : vector<16x128xf32>
    %185 = vector.broadcast %177 : vector<16x1xf32> to vector<16x128xf32>
    %186 = arith.subf %185, %5 : vector<16x128xf32>
    %187 = vector.broadcast %179 : vector<16x1xf32> to vector<16x128xf32>
    %188 = arith.mulf %186, %187 : vector<16x128xf32>
    %189 = arith.mulf %188, %73 : vector<16x128xf32>
    %190 = arith.addf %184, %189 : vector<16x128xf32>
    %c0_81 = arith.constant 0 : index
    %c7_82 = arith.constant 7 : index
    %191 = vector.load %arg2[%c0_81, %c7_82] : memref<16x12xf32, #tpu.memory_space<vmem>>, vector<16x1xf32>
    %c0_83 = arith.constant 0 : index
    %c9_84 = arith.constant 9 : index
    %192 = vector.load %arg2[%c0_83, %c9_84] : memref<16x12xf32, #tpu.memory_space<vmem>>, vector<16x1xf32>
    %c0_85 = arith.constant 0 : index
    %c7_86 = arith.constant 7 : index
    %193 = vector.load %arg3[%c0_85, %c7_86] : memref<16x36xf32, #tpu.memory_space<vmem>>, vector<16x1xf32>
    %c0_87 = arith.constant 0 : index
    %c8_88 = arith.constant 8 : index
    %194 = vector.load %arg3[%c0_87, %c8_88] : memref<16x36xf32, #tpu.memory_space<vmem>>, vector<16x1xf32>
    %195 = vector.broadcast %191 : vector<16x1xf32> to vector<16x128xf32>
    %196 = arith.subf %5, %195 : vector<16x128xf32>
    %197 = vector.broadcast %193 : vector<16x1xf32> to vector<16x128xf32>
    %198 = arith.mulf %196, %197 : vector<16x128xf32>
    %199 = arith.mulf %198, %73 : vector<16x128xf32>
    %200 = vector.broadcast %192 : vector<16x1xf32> to vector<16x128xf32>
    %201 = arith.subf %200, %5 : vector<16x128xf32>
    %202 = vector.broadcast %194 : vector<16x1xf32> to vector<16x128xf32>
    %203 = arith.mulf %201, %202 : vector<16x128xf32>
    %204 = arith.mulf %203, %77 : vector<16x128xf32>
    %205 = arith.addf %199, %204 : vector<16x128xf32>
    %c0_89 = arith.constant 0 : index
    %c8_90 = arith.constant 8 : index
    %206 = vector.load %arg2[%c0_89, %c8_90] : memref<16x12xf32, #tpu.memory_space<vmem>>, vector<16x1xf32>
    %c0_91 = arith.constant 0 : index
    %c10_92 = arith.constant 10 : index
    %207 = vector.load %arg2[%c0_91, %c10_92] : memref<16x12xf32, #tpu.memory_space<vmem>>, vector<16x1xf32>
    %c0_93 = arith.constant 0 : index
    %c8_94 = arith.constant 8 : index
    %208 = vector.load %arg3[%c0_93, %c8_94] : memref<16x36xf32, #tpu.memory_space<vmem>>, vector<16x1xf32>
    %c0_95 = arith.constant 0 : index
    %c9_96 = arith.constant 9 : index
    %209 = vector.load %arg3[%c0_95, %c9_96] : memref<16x36xf32, #tpu.memory_space<vmem>>, vector<16x1xf32>
    %210 = vector.broadcast %206 : vector<16x1xf32> to vector<16x128xf32>
    %211 = arith.subf %5, %210 : vector<16x128xf32>
    %212 = vector.broadcast %208 : vector<16x1xf32> to vector<16x128xf32>
    %213 = arith.mulf %211, %212 : vector<16x128xf32>
    %214 = arith.mulf %213, %77 : vector<16x128xf32>
    %215 = vector.broadcast %207 : vector<16x1xf32> to vector<16x128xf32>
    %216 = arith.subf %215, %5 : vector<16x128xf32>
    %217 = vector.broadcast %209 : vector<16x1xf32> to vector<16x128xf32>
    %218 = arith.mulf %216, %217 : vector<16x128xf32>
    %219 = arith.mulf %218, %81 : vector<16x128xf32>
    %220 = arith.addf %214, %219 : vector<16x128xf32>
    %c0_97 = arith.constant 0 : index
    %c9_98 = arith.constant 9 : index
    %221 = vector.load %arg2[%c0_97, %c9_98] : memref<16x12xf32, #tpu.memory_space<vmem>>, vector<16x1xf32>
    %c0_99 = arith.constant 0 : index
    %c11_100 = arith.constant 11 : index
    %222 = vector.load %arg2[%c0_99, %c11_100] : memref<16x12xf32, #tpu.memory_space<vmem>>, vector<16x1xf32>
    %c0_101 = arith.constant 0 : index
    %c9_102 = arith.constant 9 : index
    %223 = vector.load %arg3[%c0_101, %c9_102] : memref<16x36xf32, #tpu.memory_space<vmem>>, vector<16x1xf32>
    %c0_103 = arith.constant 0 : index
    %c10_104 = arith.constant 10 : index
    %224 = vector.load %arg3[%c0_103, %c10_104] : memref<16x36xf32, #tpu.memory_space<vmem>>, vector<16x1xf32>
    %225 = vector.broadcast %221 : vector<16x1xf32> to vector<16x128xf32>
    %226 = arith.subf %5, %225 : vector<16x128xf32>
    %227 = vector.broadcast %223 : vector<16x1xf32> to vector<16x128xf32>
    %228 = arith.mulf %226, %227 : vector<16x128xf32>
    %229 = arith.mulf %228, %81 : vector<16x128xf32>
    %230 = vector.broadcast %222 : vector<16x1xf32> to vector<16x128xf32>
    %231 = arith.subf %230, %5 : vector<16x128xf32>
    %232 = vector.broadcast %224 : vector<16x1xf32> to vector<16x128xf32>
    %233 = arith.mulf %231, %232 : vector<16x128xf32>
    %234 = arith.mulf %233, %85 : vector<16x128xf32>
    %235 = arith.addf %229, %234 : vector<16x128xf32>
    %c0_105 = arith.constant 0 : index
    %c0_106 = arith.constant 0 : index
    %236 = vector.load %arg2[%c0_105, %c0_106] : memref<16x12xf32, #tpu.memory_space<vmem>>, vector<16x1xf32>
    %c0_107 = arith.constant 0 : index
    %c3_108 = arith.constant 3 : index
    %237 = vector.load %arg2[%c0_107, %c3_108] : memref<16x12xf32, #tpu.memory_space<vmem>>, vector<16x1xf32>
    %c0_109 = arith.constant 0 : index
    %c12 = arith.constant 12 : index
    %238 = vector.load %arg3[%c0_109, %c12] : memref<16x36xf32, #tpu.memory_space<vmem>>, vector<16x1xf32>
    %c0_110 = arith.constant 0 : index
    %c13 = arith.constant 13 : index
    %239 = vector.load %arg3[%c0_110, %c13] : memref<16x36xf32, #tpu.memory_space<vmem>>, vector<16x1xf32>
    %240 = vector.broadcast %236 : vector<16x1xf32> to vector<16x128xf32>
    %241 = arith.subf %5, %240 : vector<16x128xf32>
    %242 = vector.broadcast %238 : vector<16x1xf32> to vector<16x128xf32>
    %243 = arith.mulf %241, %242 : vector<16x128xf32>
    %244 = arith.mulf %243, %100 : vector<16x128xf32>
    %245 = vector.broadcast %237 : vector<16x1xf32> to vector<16x128xf32>
    %246 = arith.subf %245, %5 : vector<16x128xf32>
    %247 = vector.broadcast %239 : vector<16x1xf32> to vector<16x128xf32>
    %248 = arith.mulf %246, %247 : vector<16x128xf32>
    %249 = arith.mulf %248, %115 : vector<16x128xf32>
    %250 = arith.addf %244, %249 : vector<16x128xf32>
    %c0_111 = arith.constant 0 : index
    %c1_112 = arith.constant 1 : index
    %251 = vector.load %arg2[%c0_111, %c1_112] : memref<16x12xf32, #tpu.memory_space<vmem>>, vector<16x1xf32>
    %c0_113 = arith.constant 0 : index
    %c4_114 = arith.constant 4 : index
    %252 = vector.load %arg2[%c0_113, %c4_114] : memref<16x12xf32, #tpu.memory_space<vmem>>, vector<16x1xf32>
    %c0_115 = arith.constant 0 : index
    %c13_116 = arith.constant 13 : index
    %253 = vector.load %arg3[%c0_115, %c13_116] : memref<16x36xf32, #tpu.memory_space<vmem>>, vector<16x1xf32>
    %c0_117 = arith.constant 0 : index
    %c14 = arith.constant 14 : index
    %254 = vector.load %arg3[%c0_117, %c14] : memref<16x36xf32, #tpu.memory_space<vmem>>, vector<16x1xf32>
    %255 = vector.broadcast %251 : vector<16x1xf32> to vector<16x128xf32>
    %256 = arith.subf %5, %255 : vector<16x128xf32>
    %257 = vector.broadcast %253 : vector<16x1xf32> to vector<16x128xf32>
    %258 = arith.mulf %256, %257 : vector<16x128xf32>
    %259 = arith.mulf %258, %115 : vector<16x128xf32>
    %260 = vector.broadcast %252 : vector<16x1xf32> to vector<16x128xf32>
    %261 = arith.subf %260, %5 : vector<16x128xf32>
    %262 = vector.broadcast %254 : vector<16x1xf32> to vector<16x128xf32>
    %263 = arith.mulf %261, %262 : vector<16x128xf32>
    %264 = arith.mulf %263, %130 : vector<16x128xf32>
    %265 = arith.addf %259, %264 : vector<16x128xf32>
    %c0_118 = arith.constant 0 : index
    %c2_119 = arith.constant 2 : index
    %266 = vector.load %arg2[%c0_118, %c2_119] : memref<16x12xf32, #tpu.memory_space<vmem>>, vector<16x1xf32>
    %c0_120 = arith.constant 0 : index
    %c5_121 = arith.constant 5 : index
    %267 = vector.load %arg2[%c0_120, %c5_121] : memref<16x12xf32, #tpu.memory_space<vmem>>, vector<16x1xf32>
    %c0_122 = arith.constant 0 : index
    %c14_123 = arith.constant 14 : index
    %268 = vector.load %arg3[%c0_122, %c14_123] : memref<16x36xf32, #tpu.memory_space<vmem>>, vector<16x1xf32>
    %c0_124 = arith.constant 0 : index
    %c15 = arith.constant 15 : index
    %269 = vector.load %arg3[%c0_124, %c15] : memref<16x36xf32, #tpu.memory_space<vmem>>, vector<16x1xf32>
    %270 = vector.broadcast %266 : vector<16x1xf32> to vector<16x128xf32>
    %271 = arith.subf %5, %270 : vector<16x128xf32>
    %272 = vector.broadcast %268 : vector<16x1xf32> to vector<16x128xf32>
    %273 = arith.mulf %271, %272 : vector<16x128xf32>
    %274 = arith.mulf %273, %130 : vector<16x128xf32>
    %275 = vector.broadcast %267 : vector<16x1xf32> to vector<16x128xf32>
    %276 = arith.subf %275, %5 : vector<16x128xf32>
    %277 = vector.broadcast %269 : vector<16x1xf32> to vector<16x128xf32>
    %278 = arith.mulf %276, %277 : vector<16x128xf32>
    %279 = arith.mulf %278, %145 : vector<16x128xf32>
    %280 = arith.addf %274, %279 : vector<16x128xf32>
    %c0_125 = arith.constant 0 : index
    %c3_126 = arith.constant 3 : index
    %281 = vector.load %arg2[%c0_125, %c3_126] : memref<16x12xf32, #tpu.memory_space<vmem>>, vector<16x1xf32>
    %c0_127 = arith.constant 0 : index
    %c6_128 = arith.constant 6 : index
    %282 = vector.load %arg2[%c0_127, %c6_128] : memref<16x12xf32, #tpu.memory_space<vmem>>, vector<16x1xf32>
    %c0_129 = arith.constant 0 : index
    %c15_130 = arith.constant 15 : index
    %283 = vector.load %arg3[%c0_129, %c15_130] : memref<16x36xf32, #tpu.memory_space<vmem>>, vector<16x1xf32>
    %c0_131 = arith.constant 0 : index
    %c16 = arith.constant 16 : index
    %284 = vector.load %arg3[%c0_131, %c16] : memref<16x36xf32, #tpu.memory_space<vmem>>, vector<16x1xf32>
    %285 = vector.broadcast %281 : vector<16x1xf32> to vector<16x128xf32>
    %286 = arith.subf %5, %285 : vector<16x128xf32>
    %287 = vector.broadcast %283 : vector<16x1xf32> to vector<16x128xf32>
    %288 = arith.mulf %286, %287 : vector<16x128xf32>
    %289 = arith.mulf %288, %145 : vector<16x128xf32>
    %290 = vector.broadcast %282 : vector<16x1xf32> to vector<16x128xf32>
    %291 = arith.subf %290, %5 : vector<16x128xf32>
    %292 = vector.broadcast %284 : vector<16x1xf32> to vector<16x128xf32>
    %293 = arith.mulf %291, %292 : vector<16x128xf32>
    %294 = arith.mulf %293, %160 : vector<16x128xf32>
    %295 = arith.addf %289, %294 : vector<16x128xf32>
    %c0_132 = arith.constant 0 : index
    %c4_133 = arith.constant 4 : index
    %296 = vector.load %arg2[%c0_132, %c4_133] : memref<16x12xf32, #tpu.memory_space<vmem>>, vector<16x1xf32>
    %c0_134 = arith.constant 0 : index
    %c7_135 = arith.constant 7 : index
    %297 = vector.load %arg2[%c0_134, %c7_135] : memref<16x12xf32, #tpu.memory_space<vmem>>, vector<16x1xf32>
    %c0_136 = arith.constant 0 : index
    %c16_137 = arith.constant 16 : index
    %298 = vector.load %arg3[%c0_136, %c16_137] : memref<16x36xf32, #tpu.memory_space<vmem>>, vector<16x1xf32>
    %c0_138 = arith.constant 0 : index
    %c17 = arith.constant 17 : index
    %299 = vector.load %arg3[%c0_138, %c17] : memref<16x36xf32, #tpu.memory_space<vmem>>, vector<16x1xf32>
    %300 = vector.broadcast %296 : vector<16x1xf32> to vector<16x128xf32>
    %301 = arith.subf %5, %300 : vector<16x128xf32>
    %302 = vector.broadcast %298 : vector<16x1xf32> to vector<16x128xf32>
    %303 = arith.mulf %301, %302 : vector<16x128xf32>
    %304 = arith.mulf %303, %160 : vector<16x128xf32>
    %305 = vector.broadcast %297 : vector<16x1xf32> to vector<16x128xf32>
    %306 = arith.subf %305, %5 : vector<16x128xf32>
    %307 = vector.broadcast %299 : vector<16x1xf32> to vector<16x128xf32>
    %308 = arith.mulf %306, %307 : vector<16x128xf32>
    %309 = arith.mulf %308, %175 : vector<16x128xf32>
    %310 = arith.addf %304, %309 : vector<16x128xf32>
    %c0_139 = arith.constant 0 : index
    %c5_140 = arith.constant 5 : index
    %311 = vector.load %arg2[%c0_139, %c5_140] : memref<16x12xf32, #tpu.memory_space<vmem>>, vector<16x1xf32>
    %c0_141 = arith.constant 0 : index
    %c8_142 = arith.constant 8 : index
    %312 = vector.load %arg2[%c0_141, %c8_142] : memref<16x12xf32, #tpu.memory_space<vmem>>, vector<16x1xf32>
    %c0_143 = arith.constant 0 : index
    %c17_144 = arith.constant 17 : index
    %313 = vector.load %arg3[%c0_143, %c17_144] : memref<16x36xf32, #tpu.memory_space<vmem>>, vector<16x1xf32>
    %c0_145 = arith.constant 0 : index
    %c18 = arith.constant 18 : index
    %314 = vector.load %arg3[%c0_145, %c18] : memref<16x36xf32, #tpu.memory_space<vmem>>, vector<16x1xf32>
    %315 = vector.broadcast %311 : vector<16x1xf32> to vector<16x128xf32>
    %316 = arith.subf %5, %315 : vector<16x128xf32>
    %317 = vector.broadcast %313 : vector<16x1xf32> to vector<16x128xf32>
    %318 = arith.mulf %316, %317 : vector<16x128xf32>
    %319 = arith.mulf %318, %175 : vector<16x128xf32>
    %320 = vector.broadcast %312 : vector<16x1xf32> to vector<16x128xf32>
    %321 = arith.subf %320, %5 : vector<16x128xf32>
    %322 = vector.broadcast %314 : vector<16x1xf32> to vector<16x128xf32>
    %323 = arith.mulf %321, %322 : vector<16x128xf32>
    %324 = arith.mulf %323, %190 : vector<16x128xf32>
    %325 = arith.addf %319, %324 : vector<16x128xf32>
    %c0_146 = arith.constant 0 : index
    %c6_147 = arith.constant 6 : index
    %326 = vector.load %arg2[%c0_146, %c6_147] : memref<16x12xf32, #tpu.memory_space<vmem>>, vector<16x1xf32>
    %c0_148 = arith.constant 0 : index
    %c9_149 = arith.constant 9 : index
    %327 = vector.load %arg2[%c0_148, %c9_149] : memref<16x12xf32, #tpu.memory_space<vmem>>, vector<16x1xf32>
    %c0_150 = arith.constant 0 : index
    %c18_151 = arith.constant 18 : index
    %328 = vector.load %arg3[%c0_150, %c18_151] : memref<16x36xf32, #tpu.memory_space<vmem>>, vector<16x1xf32>
    %c0_152 = arith.constant 0 : index
    %c19 = arith.constant 19 : index
    %329 = vector.load %arg3[%c0_152, %c19] : memref<16x36xf32, #tpu.memory_space<vmem>>, vector<16x1xf32>
    %330 = vector.broadcast %326 : vector<16x1xf32> to vector<16x128xf32>
    %331 = arith.subf %5, %330 : vector<16x128xf32>
    %332 = vector.broadcast %328 : vector<16x1xf32> to vector<16x128xf32>
    %333 = arith.mulf %331, %332 : vector<16x128xf32>
    %334 = arith.mulf %333, %190 : vector<16x128xf32>
    %335 = vector.broadcast %327 : vector<16x1xf32> to vector<16x128xf32>
    %336 = arith.subf %335, %5 : vector<16x128xf32>
    %337 = vector.broadcast %329 : vector<16x1xf32> to vector<16x128xf32>
    %338 = arith.mulf %336, %337 : vector<16x128xf32>
    %339 = arith.mulf %338, %205 : vector<16x128xf32>
    %340 = arith.addf %334, %339 : vector<16x128xf32>
    %c0_153 = arith.constant 0 : index
    %c7_154 = arith.constant 7 : index
    %341 = vector.load %arg2[%c0_153, %c7_154] : memref<16x12xf32, #tpu.memory_space<vmem>>, vector<16x1xf32>
    %c0_155 = arith.constant 0 : index
    %c10_156 = arith.constant 10 : index
    %342 = vector.load %arg2[%c0_155, %c10_156] : memref<16x12xf32, #tpu.memory_space<vmem>>, vector<16x1xf32>
    %c0_157 = arith.constant 0 : index
    %c19_158 = arith.constant 19 : index
    %343 = vector.load %arg3[%c0_157, %c19_158] : memref<16x36xf32, #tpu.memory_space<vmem>>, vector<16x1xf32>
    %c0_159 = arith.constant 0 : index
    %c20 = arith.constant 20 : index
    %344 = vector.load %arg3[%c0_159, %c20] : memref<16x36xf32, #tpu.memory_space<vmem>>, vector<16x1xf32>
    %345 = vector.broadcast %341 : vector<16x1xf32> to vector<16x128xf32>
    %346 = arith.subf %5, %345 : vector<16x128xf32>
    %347 = vector.broadcast %343 : vector<16x1xf32> to vector<16x128xf32>
    %348 = arith.mulf %346, %347 : vector<16x128xf32>
    %349 = arith.mulf %348, %205 : vector<16x128xf32>
    %350 = vector.broadcast %342 : vector<16x1xf32> to vector<16x128xf32>
    %351 = arith.subf %350, %5 : vector<16x128xf32>
    %352 = vector.broadcast %344 : vector<16x1xf32> to vector<16x128xf32>
    %353 = arith.mulf %351, %352 : vector<16x128xf32>
    %354 = arith.mulf %353, %220 : vector<16x128xf32>
    %355 = arith.addf %349, %354 : vector<16x128xf32>
    %c0_160 = arith.constant 0 : index
    %c8_161 = arith.constant 8 : index
    %356 = vector.load %arg2[%c0_160, %c8_161] : memref<16x12xf32, #tpu.memory_space<vmem>>, vector<16x1xf32>
    %c0_162 = arith.constant 0 : index
    %c11_163 = arith.constant 11 : index
    %357 = vector.load %arg2[%c0_162, %c11_163] : memref<16x12xf32, #tpu.memory_space<vmem>>, vector<16x1xf32>
    %c0_164 = arith.constant 0 : index
    %c20_165 = arith.constant 20 : index
    %358 = vector.load %arg3[%c0_164, %c20_165] : memref<16x36xf32, #tpu.memory_space<vmem>>, vector<16x1xf32>
    %c0_166 = arith.constant 0 : index
    %c21 = arith.constant 21 : index
    %359 = vector.load %arg3[%c0_166, %c21] : memref<16x36xf32, #tpu.memory_space<vmem>>, vector<16x1xf32>
    %360 = vector.broadcast %356 : vector<16x1xf32> to vector<16x128xf32>
    %361 = arith.subf %5, %360 : vector<16x128xf32>
    %362 = vector.broadcast %358 : vector<16x1xf32> to vector<16x128xf32>
    %363 = arith.mulf %361, %362 : vector<16x128xf32>
    %364 = arith.mulf %363, %220 : vector<16x128xf32>
    %365 = vector.broadcast %357 : vector<16x1xf32> to vector<16x128xf32>
    %366 = arith.subf %365, %5 : vector<16x128xf32>
    %367 = vector.broadcast %359 : vector<16x1xf32> to vector<16x128xf32>
    %368 = arith.mulf %366, %367 : vector<16x128xf32>
    %369 = arith.mulf %368, %235 : vector<16x128xf32>
    %370 = arith.addf %364, %369 : vector<16x128xf32>
    %c0_167 = arith.constant 0 : index
    %c0_168 = arith.constant 0 : index
    %371 = vector.load %arg2[%c0_167, %c0_168] : memref<16x12xf32, #tpu.memory_space<vmem>>, vector<16x1xf32>
    %c0_169 = arith.constant 0 : index
    %c4_170 = arith.constant 4 : index
    %372 = vector.load %arg2[%c0_169, %c4_170] : memref<16x12xf32, #tpu.memory_space<vmem>>, vector<16x1xf32>
    %c0_171 = arith.constant 0 : index
    %c24 = arith.constant 24 : index
    %373 = vector.load %arg3[%c0_171, %c24] : memref<16x36xf32, #tpu.memory_space<vmem>>, vector<16x1xf32>
    %c0_172 = arith.constant 0 : index
    %c25 = arith.constant 25 : index
    %374 = vector.load %arg3[%c0_172, %c25] : memref<16x36xf32, #tpu.memory_space<vmem>>, vector<16x1xf32>
    %375 = vector.broadcast %371 : vector<16x1xf32> to vector<16x128xf32>
    %376 = arith.subf %5, %375 : vector<16x128xf32>
    %377 = vector.broadcast %373 : vector<16x1xf32> to vector<16x128xf32>
    %378 = arith.mulf %376, %377 : vector<16x128xf32>
    %379 = arith.mulf %378, %250 : vector<16x128xf32>
    %380 = vector.broadcast %372 : vector<16x1xf32> to vector<16x128xf32>
    %381 = arith.subf %380, %5 : vector<16x128xf32>
    %382 = vector.broadcast %374 : vector<16x1xf32> to vector<16x128xf32>
    %383 = arith.mulf %381, %382 : vector<16x128xf32>
    %384 = arith.mulf %383, %265 : vector<16x128xf32>
    %385 = arith.addf %379, %384 : vector<16x128xf32>
    %c0_173 = arith.constant 0 : index
    %c1_174 = arith.constant 1 : index
    %386 = vector.load %arg2[%c0_173, %c1_174] : memref<16x12xf32, #tpu.memory_space<vmem>>, vector<16x1xf32>
    %c0_175 = arith.constant 0 : index
    %c5_176 = arith.constant 5 : index
    %387 = vector.load %arg2[%c0_175, %c5_176] : memref<16x12xf32, #tpu.memory_space<vmem>>, vector<16x1xf32>
    %c0_177 = arith.constant 0 : index
    %c25_178 = arith.constant 25 : index
    %388 = vector.load %arg3[%c0_177, %c25_178] : memref<16x36xf32, #tpu.memory_space<vmem>>, vector<16x1xf32>
    %c0_179 = arith.constant 0 : index
    %c26 = arith.constant 26 : index
    %389 = vector.load %arg3[%c0_179, %c26] : memref<16x36xf32, #tpu.memory_space<vmem>>, vector<16x1xf32>
    %390 = vector.broadcast %386 : vector<16x1xf32> to vector<16x128xf32>
    %391 = arith.subf %5, %390 : vector<16x128xf32>
    %392 = vector.broadcast %388 : vector<16x1xf32> to vector<16x128xf32>
    %393 = arith.mulf %391, %392 : vector<16x128xf32>
    %394 = arith.mulf %393, %265 : vector<16x128xf32>
    %395 = vector.broadcast %387 : vector<16x1xf32> to vector<16x128xf32>
    %396 = arith.subf %395, %5 : vector<16x128xf32>
    %397 = vector.broadcast %389 : vector<16x1xf32> to vector<16x128xf32>
    %398 = arith.mulf %396, %397 : vector<16x128xf32>
    %399 = arith.mulf %398, %280 : vector<16x128xf32>
    %400 = arith.addf %394, %399 : vector<16x128xf32>
    %c0_180 = arith.constant 0 : index
    %c2_181 = arith.constant 2 : index
    %401 = vector.load %arg2[%c0_180, %c2_181] : memref<16x12xf32, #tpu.memory_space<vmem>>, vector<16x1xf32>
    %c0_182 = arith.constant 0 : index
    %c6_183 = arith.constant 6 : index
    %402 = vector.load %arg2[%c0_182, %c6_183] : memref<16x12xf32, #tpu.memory_space<vmem>>, vector<16x1xf32>
    %c0_184 = arith.constant 0 : index
    %c26_185 = arith.constant 26 : index
    %403 = vector.load %arg3[%c0_184, %c26_185] : memref<16x36xf32, #tpu.memory_space<vmem>>, vector<16x1xf32>
    %c0_186 = arith.constant 0 : index
    %c27 = arith.constant 27 : index
    %404 = vector.load %arg3[%c0_186, %c27] : memref<16x36xf32, #tpu.memory_space<vmem>>, vector<16x1xf32>
    %405 = vector.broadcast %401 : vector<16x1xf32> to vector<16x128xf32>
    %406 = arith.subf %5, %405 : vector<16x128xf32>
    %407 = vector.broadcast %403 : vector<16x1xf32> to vector<16x128xf32>
    %408 = arith.mulf %406, %407 : vector<16x128xf32>
    %409 = arith.mulf %408, %280 : vector<16x128xf32>
    %410 = vector.broadcast %402 : vector<16x1xf32> to vector<16x128xf32>
    %411 = arith.subf %410, %5 : vector<16x128xf32>
    %412 = vector.broadcast %404 : vector<16x1xf32> to vector<16x128xf32>
    %413 = arith.mulf %411, %412 : vector<16x128xf32>
    %414 = arith.mulf %413, %295 : vector<16x128xf32>
    %415 = arith.addf %409, %414 : vector<16x128xf32>
    %c0_187 = arith.constant 0 : index
    %c3_188 = arith.constant 3 : index
    %416 = vector.load %arg2[%c0_187, %c3_188] : memref<16x12xf32, #tpu.memory_space<vmem>>, vector<16x1xf32>
    %c0_189 = arith.constant 0 : index
    %c7_190 = arith.constant 7 : index
    %417 = vector.load %arg2[%c0_189, %c7_190] : memref<16x12xf32, #tpu.memory_space<vmem>>, vector<16x1xf32>
    %c0_191 = arith.constant 0 : index
    %c27_192 = arith.constant 27 : index
    %418 = vector.load %arg3[%c0_191, %c27_192] : memref<16x36xf32, #tpu.memory_space<vmem>>, vector<16x1xf32>
    %c0_193 = arith.constant 0 : index
    %c28 = arith.constant 28 : index
    %419 = vector.load %arg3[%c0_193, %c28] : memref<16x36xf32, #tpu.memory_space<vmem>>, vector<16x1xf32>
    %420 = vector.broadcast %416 : vector<16x1xf32> to vector<16x128xf32>
    %421 = arith.subf %5, %420 : vector<16x128xf32>
    %422 = vector.broadcast %418 : vector<16x1xf32> to vector<16x128xf32>
    %423 = arith.mulf %421, %422 : vector<16x128xf32>
    %424 = arith.mulf %423, %295 : vector<16x128xf32>
    %425 = vector.broadcast %417 : vector<16x1xf32> to vector<16x128xf32>
    %426 = arith.subf %425, %5 : vector<16x128xf32>
    %427 = vector.broadcast %419 : vector<16x1xf32> to vector<16x128xf32>
    %428 = arith.mulf %426, %427 : vector<16x128xf32>
    %429 = arith.mulf %428, %310 : vector<16x128xf32>
    %430 = arith.addf %424, %429 : vector<16x128xf32>
    %c0_194 = arith.constant 0 : index
    %c4_195 = arith.constant 4 : index
    %431 = vector.load %arg2[%c0_194, %c4_195] : memref<16x12xf32, #tpu.memory_space<vmem>>, vector<16x1xf32>
    %c0_196 = arith.constant 0 : index
    %c8_197 = arith.constant 8 : index
    %432 = vector.load %arg2[%c0_196, %c8_197] : memref<16x12xf32, #tpu.memory_space<vmem>>, vector<16x1xf32>
    %c0_198 = arith.constant 0 : index
    %c28_199 = arith.constant 28 : index
    %433 = vector.load %arg3[%c0_198, %c28_199] : memref<16x36xf32, #tpu.memory_space<vmem>>, vector<16x1xf32>
    %c0_200 = arith.constant 0 : index
    %c29 = arith.constant 29 : index
    %434 = vector.load %arg3[%c0_200, %c29] : memref<16x36xf32, #tpu.memory_space<vmem>>, vector<16x1xf32>
    %435 = vector.broadcast %431 : vector<16x1xf32> to vector<16x128xf32>
    %436 = arith.subf %5, %435 : vector<16x128xf32>
    %437 = vector.broadcast %433 : vector<16x1xf32> to vector<16x128xf32>
    %438 = arith.mulf %436, %437 : vector<16x128xf32>
    %439 = arith.mulf %438, %310 : vector<16x128xf32>
    %440 = vector.broadcast %432 : vector<16x1xf32> to vector<16x128xf32>
    %441 = arith.subf %440, %5 : vector<16x128xf32>
    %442 = vector.broadcast %434 : vector<16x1xf32> to vector<16x128xf32>
    %443 = arith.mulf %441, %442 : vector<16x128xf32>
    %444 = arith.mulf %443, %325 : vector<16x128xf32>
    %445 = arith.addf %439, %444 : vector<16x128xf32>
    %c0_201 = arith.constant 0 : index
    %c5_202 = arith.constant 5 : index
    %446 = vector.load %arg2[%c0_201, %c5_202] : memref<16x12xf32, #tpu.memory_space<vmem>>, vector<16x1xf32>
    %c0_203 = arith.constant 0 : index
    %c9_204 = arith.constant 9 : index
    %447 = vector.load %arg2[%c0_203, %c9_204] : memref<16x12xf32, #tpu.memory_space<vmem>>, vector<16x1xf32>
    %c0_205 = arith.constant 0 : index
    %c29_206 = arith.constant 29 : index
    %448 = vector.load %arg3[%c0_205, %c29_206] : memref<16x36xf32, #tpu.memory_space<vmem>>, vector<16x1xf32>
    %c0_207 = arith.constant 0 : index
    %c30 = arith.constant 30 : index
    %449 = vector.load %arg3[%c0_207, %c30] : memref<16x36xf32, #tpu.memory_space<vmem>>, vector<16x1xf32>
    %450 = vector.broadcast %446 : vector<16x1xf32> to vector<16x128xf32>
    %451 = arith.subf %5, %450 : vector<16x128xf32>
    %452 = vector.broadcast %448 : vector<16x1xf32> to vector<16x128xf32>
    %453 = arith.mulf %451, %452 : vector<16x128xf32>
    %454 = arith.mulf %453, %325 : vector<16x128xf32>
    %455 = vector.broadcast %447 : vector<16x1xf32> to vector<16x128xf32>
    %456 = arith.subf %455, %5 : vector<16x128xf32>
    %457 = vector.broadcast %449 : vector<16x1xf32> to vector<16x128xf32>
    %458 = arith.mulf %456, %457 : vector<16x128xf32>
    %459 = arith.mulf %458, %340 : vector<16x128xf32>
    %460 = arith.addf %454, %459 : vector<16x128xf32>
    %c0_208 = arith.constant 0 : index
    %c6_209 = arith.constant 6 : index
    %461 = vector.load %arg2[%c0_208, %c6_209] : memref<16x12xf32, #tpu.memory_space<vmem>>, vector<16x1xf32>
    %c0_210 = arith.constant 0 : index
    %c10_211 = arith.constant 10 : index
    %462 = vector.load %arg2[%c0_210, %c10_211] : memref<16x12xf32, #tpu.memory_space<vmem>>, vector<16x1xf32>
    %c0_212 = arith.constant 0 : index
    %c30_213 = arith.constant 30 : index
    %463 = vector.load %arg3[%c0_212, %c30_213] : memref<16x36xf32, #tpu.memory_space<vmem>>, vector<16x1xf32>
    %c0_214 = arith.constant 0 : index
    %c31 = arith.constant 31 : index
    %464 = vector.load %arg3[%c0_214, %c31] : memref<16x36xf32, #tpu.memory_space<vmem>>, vector<16x1xf32>
    %465 = vector.broadcast %461 : vector<16x1xf32> to vector<16x128xf32>
    %466 = arith.subf %5, %465 : vector<16x128xf32>
    %467 = vector.broadcast %463 : vector<16x1xf32> to vector<16x128xf32>
    %468 = arith.mulf %466, %467 : vector<16x128xf32>
    %469 = arith.mulf %468, %340 : vector<16x128xf32>
    %470 = vector.broadcast %462 : vector<16x1xf32> to vector<16x128xf32>
    %471 = arith.subf %470, %5 : vector<16x128xf32>
    %472 = vector.broadcast %464 : vector<16x1xf32> to vector<16x128xf32>
    %473 = arith.mulf %471, %472 : vector<16x128xf32>
    %474 = arith.mulf %473, %355 : vector<16x128xf32>
    %475 = arith.addf %469, %474 : vector<16x128xf32>
    %c0_215 = arith.constant 0 : index
    %c7_216 = arith.constant 7 : index
    %476 = vector.load %arg2[%c0_215, %c7_216] : memref<16x12xf32, #tpu.memory_space<vmem>>, vector<16x1xf32>
    %c0_217 = arith.constant 0 : index
    %c11_218 = arith.constant 11 : index
    %477 = vector.load %arg2[%c0_217, %c11_218] : memref<16x12xf32, #tpu.memory_space<vmem>>, vector<16x1xf32>
    %c0_219 = arith.constant 0 : index
    %c31_220 = arith.constant 31 : index
    %478 = vector.load %arg3[%c0_219, %c31_220] : memref<16x36xf32, #tpu.memory_space<vmem>>, vector<16x1xf32>
    %c0_221 = arith.constant 0 : index
    %c32 = arith.constant 32 : index
    %479 = vector.load %arg3[%c0_221, %c32] : memref<16x36xf32, #tpu.memory_space<vmem>>, vector<16x1xf32>
    %480 = vector.broadcast %476 : vector<16x1xf32> to vector<16x128xf32>
    %481 = arith.subf %5, %480 : vector<16x128xf32>
    %482 = vector.broadcast %478 : vector<16x1xf32> to vector<16x128xf32>
    %483 = arith.mulf %481, %482 : vector<16x128xf32>
    %484 = arith.mulf %483, %355 : vector<16x128xf32>
    %485 = vector.broadcast %477 : vector<16x1xf32> to vector<16x128xf32>
    %486 = arith.subf %485, %5 : vector<16x128xf32>
    %487 = vector.broadcast %479 : vector<16x1xf32> to vector<16x128xf32>
    %488 = arith.mulf %486, %487 : vector<16x128xf32>
    %489 = arith.mulf %488, %370 : vector<16x128xf32>
    %490 = arith.addf %484, %489 : vector<16x128xf32>
    %491 = arith.negf %5 : vector<16x128xf32>
    %492 = math.exp %491 : vector<16x128xf32>
    %cst_222 = arith.constant 1.000000e+00 : f32
    %493 = vector.broadcast %cst_222 : f32 to vector<16x128xf32>
    %494 = arith.addf %493, %492 : vector<16x128xf32>
    %495 = arith.divf %493, %494 : vector<16x128xf32>
    %496 = arith.mulf %5, %495 : vector<16x128xf32>
    %c0_223 = arith.constant 0 : index
    %497 = arith.index_cast %3 : i32 to index
    %498 = vector.load %arg6[%c0_223, %497] : memref<256x128xf32, #tpu.memory_space<vmem>>, vector<16x128xf32>
    tpu.vector_store %arg6[%c0_223, %497], %496 {strides = array<i32>} : memref<256x128xf32, #tpu.memory_space<vmem>>, vector<16x128xf32>,
    %c16_224 = arith.constant 16 : index
    %499 = arith.index_cast %3 : i32 to index
    %500 = vector.load %arg6[%c16_224, %499] : memref<256x128xf32, #tpu.memory_space<vmem>>, vector<16x128xf32>
    tpu.vector_store %arg6[%c16_224, %499], %385 {strides = array<i32>} : memref<256x128xf32, #tpu.memory_space<vmem>>, vector<16x128xf32>,
    %c32_225 = arith.constant 32 : index
    %501 = arith.index_cast %3 : i32 to index
    %502 = vector.load %arg6[%c32_225, %501] : memref<256x128xf32, #tpu.memory_space<vmem>>, vector<16x128xf32>
    tpu.vector_store %arg6[%c32_225, %501], %400 {strides = array<i32>} : memref<256x128xf32, #tpu.memory_space<vmem>>, vector<16x128xf32>,
    %c48 = arith.constant 48 : index
    %503 = arith.index_cast %3 : i32 to index
    %504 = vector.load %arg6[%c48, %503] : memref<256x128xf32, #tpu.memory_space<vmem>>, vector<16x128xf32>
    tpu.vector_store %arg6[%c48, %503], %415 {strides = array<i32>} : memref<256x128xf32, #tpu.memory_space<vmem>>, vector<16x128xf32>,
    %c64 = arith.constant 64 : index
    %505 = arith.index_cast %3 : i32 to index
    %506 = vector.load %arg6[%c64, %505] : memref<256x128xf32, #tpu.memory_space<vmem>>, vector<16x128xf32>
    tpu.vector_store %arg6[%c64, %505], %430 {strides = array<i32>} : memref<256x128xf32, #tpu.memory_space<vmem>>, vector<16x128xf32>,
    %c80 = arith.constant 80 : index
    %507 = arith.index_cast %3 : i32 to index
    %508 = vector.load %arg6[%c80, %507] : memref<256x128xf32, #tpu.memory_space<vmem>>, vector<16x128xf32>
    tpu.vector_store %arg6[%c80, %507], %445 {strides = array<i32>} : memref<256x128xf32, #tpu.memory_space<vmem>>, vector<16x128xf32>,
    %c96 = arith.constant 96 : index
    %509 = arith.index_cast %3 : i32 to index
    %510 = vector.load %arg6[%c96, %509] : memref<256x128xf32, #tpu.memory_space<vmem>>, vector<16x128xf32>
    tpu.vector_store %arg6[%c96, %509], %460 {strides = array<i32>} : memref<256x128xf32, #tpu.memory_space<vmem>>, vector<16x128xf32>,
    %c112 = arith.constant 112 : index
    %511 = arith.index_cast %3 : i32 to index
    %512 = vector.load %arg6[%c112, %511] : memref<256x128xf32, #tpu.memory_space<vmem>>, vector<16x128xf32>
    tpu.vector_store %arg6[%c112, %511], %475 {strides = array<i32>} : memref<256x128xf32, #tpu.memory_space<vmem>>, vector<16x128xf32>,
    %c128 = arith.constant 128 : index
    %513 = arith.index_cast %3 : i32 to index
    %514 = vector.load %arg6[%c128, %513] : memref<256x128xf32, #tpu.memory_space<vmem>>, vector<16x128xf32>
    tpu.vector_store %arg6[%c128, %513], %490 {strides = array<i32>} : memref<256x128xf32, #tpu.memory_space<vmem>>, vector<16x128xf32>,
    %c1_i32 = arith.constant 1 : i32
    %c0_226 = arith.constant 0 : index
    %c0_227 = arith.constant 0 : index
    %515 = vector.load %arg4[%c0_226, %c0_227] : memref<32x256xf32, #tpu.memory_space<vmem>>, vector<32x256xf32>
    %c0_228 = arith.constant 0 : index
    %c0_229 = arith.constant 0 : index
    %516 = vector.load %arg6[%c0_228, %c0_229] : memref<256x128xf32, #tpu.memory_space<vmem>>, vector<256x128xf32>
    %cst_230 = arith.constant dense<0.000000e+00> : vector<32x128xf32>
    %517 = tpu.matmul %515, %516, %cst_230 {dimension_numbers = #tpu.dot_dimension_numbers<[1], [0], [0], [1], [0, 0, 1, 1], [], []>} : vector<32x256xf32>, vector<256x128xf32>, vector<32x128xf32> -> vector<32x128xf32>
    %c0_231 = arith.constant 0 : index
    %c0_232 = arith.constant 0 : index
    %518 = vector.load %arg5[%c0_231, %c0_232] : memref<32x128xf32, #tpu.memory_space<vmem>>, vector<32x128xf32>
    tpu.vector_store %arg5[%c0_231, %c0_232], %517 {strides = array<i32>} : memref<32x128xf32, #tpu.memory_space<vmem>>, vector<32x128xf32>,
    return
  }
  func.func @transform_0(%arg0: i32) -> (i32, i32) {
    %c0_i32 = arith.constant 0 : i32
    %c0_i32_0 = arith.constant 0 : i32
    return %c0_i32, %arg0 : i32, i32
  }
  func.func @transform_1(%arg0: i32) -> (i32, i32) {
    %c0_i32 = arith.constant 0 : i32
    %c0_i32_0 = arith.constant 0 : i32
    %c0_i32_1 = arith.constant 0 : i32
    return %c0_i32, %c0_i32_0 : i32, i32
  }
  func.func @transform_2(%arg0: i32) -> (i32, i32) {
    %c0_i32 = arith.constant 0 : i32
    %c0_i32_0 = arith.constant 0 : i32
    %c0_i32_1 = arith.constant 0 : i32
    return %c0_i32, %c0_i32_0 : i32, i32
  }
  func.func @transform_3(%arg0: i32) -> (i32, i32) {
    %c0_i32 = arith.constant 0 : i32
    %c0_i32_0 = arith.constant 0 : i32
    %c0_i32_1 = arith.constant 0 : i32
    return %c0_i32, %c0_i32_0 : i32, i32
  }
  func.func @transform_4(%arg0: i32) -> (i32, i32) {
    %c0_i32 = arith.constant 0 : i32
    %c0_i32_0 = arith.constant 0 : i32
    return %c0_i32, %arg0 : i32, i32
  }
}

</mosaic_0001>

<bundles_post_ra>
// kernel: tpu_custom_call.1
= control target key start
LH: loop header
LB: loop body
LE: loop exit
PB: predicated region body
PF: predicated region fallthrough
CT: control target
= control target key end

     0   :  { %9 = vsyncpa [#allocation4], 0  ;;  %s2376_s0 = inlined_call_operand.hbm [shape: f32[16,128], index: 0, kind: input, shape index: {}]   ;;  %s2377_s1 = inlined_call_operand.hbm [shape: f32[16,12], index: 1, kind: input, shape index: {}]   ;;  %s2378_s2 = inlined_call_operand.hbm [shape: f32[16,36], index: 2, kind: input, shape index: {}]   ;;  %s2379_s3 = inlined_call_operand.hbm [shape: f32[32,256], index: 3, kind: input, shape index: {}]   ;;  %s2380_s4 = inlined_call_operand.hbm [shape: f32[32,128], index: 4, kind: output, shape index: {}]  }
   0x1   :  { %10 = vsyncpa [#allocation7], 0 }
   0x2   :  { %11 = vsyncpa [#allocation10], 0 }
   0x3   :  { %12 = vsyncpa [#allocation5], 0  ;;  %s30_s17 = sshll.u32 %s2377_s1, 4  ;;  %s1354_s18 = smov [#allocation6]   ;;  %s31_s17 = int_to_ptr.hbm [resolvable:$true] %s30_s17 }
   0x4   :  { %s32_s19 = sshll.u32 %s1354_s18, 4  ;;  %s17_s22 = sshll.u32 %s2376_s0, 4  ;;  %s33_s19 = int_to_ptr.vmem [resolvable:$true] %s32_s19  ;;  %s18_s22 = int_to_ptr.hbm [resolvable:$true] %s17_s22 }
   0x5   :  { %s1355_s23 = smov 128   ;;  %s1356_s24 = smov 8  }
   0x6   :  { %38 = dma.hbm_to_vmem [thread:$0]  %s31_s17, 256, %s33_s19, [#allocation7], %s1355_s23, %s1355_s23, %s1356_s24  }
   0x7   :  { %s1357_s25 = smov [#allocation3]   ;;  %s43_s1 = sshll.u32 %s2378_s2, 4  ;;  %s44_s1 = int_to_ptr.hbm [resolvable:$true] %s43_s1 }
   0x8   :  { %s19_s26 = sshll.u32 %s1357_s25, 4  ;;  %s56_s30 = sshll.u32 %s2379_s3, 4  ;;  %s20_s26 = int_to_ptr.vmem [resolvable:$true] %s19_s26  ;;  %s57_s30 = int_to_ptr.hbm [resolvable:$true] %s56_s30 }
   0x9   :  { %25 = dma.hbm_to_vmem [thread:$0]  %s18_s22, 256, %s20_s26, [#allocation4], %s1355_s23, %s1355_s23, %s1356_s24  }
   0xa   :  { %s1358_s5 = smov [#allocation8]   ;;  %s1359_s7 = smov [#allocation9]  }
   0xb   :  { %s45_s6 = sshll.u32 %s1358_s5, 4  ;;  %s58_s2 = sshll.u32 %s1359_s7, 4  ;;  %s46_s6 = int_to_ptr.vmem [resolvable:$true] %s45_s6  ;;  %s59_s2 = int_to_ptr.vmem [resolvable:$true] %s58_s2 }
   0xc   :  { %51 = dma.hbm_to_vmem [thread:$0]  %s44_s1, 256, %s46_s6, [#allocation7], %s1355_s23, %s1355_s23, %s1356_s24  }
   0xd   :  { %s1360_s8 = smov 256   ;;  %s1361_s9 = smov 16  }
   0xe   :  { %64 = dma.hbm_to_vmem [thread:$0]  %s57_s30, 1024, %s59_s2, [#allocation10], %s1360_s8, %s1360_s8, %s1361_s9  }
   0xf   :  { %1346 = dma.done.wait [#allocation4], 256  }
  0x10   :  { %1347 = vsyncadd [#allocation4], 4294967040 }
  0x11   :  { %1348 = dma.done.wait [#allocation7], 512  }
  0x12   :  { %1349 = vsyncadd [#allocation7], 4294966784 }
  0x13   :  { %1350 = dma.done.wait [#allocation10], 1024  }
  0x14   :  { %1351 = vsyncadd [#allocation10], 4294966272  ;;  %v1362_v0 = vmov 2   ;;  %v1363_v1 = vmov 1   ;;  %v1364_v2 = vmov 0   ;;  %v97_v3 = vld [vmem:[#allocation6] sm:$0xff] }
  0x15   :  { %1144 = vset.pattern.permute.xlu2 %v1362_v0  ;;  %1143 = vset.pattern.permute.xlu1 %v1363_v1  ;;  %v98_v4 = vld [vmem:[#allocation6 + $0x8] sm:$0xff]  ;;  %v1365_v5 = vmov 4   ;;  %v1366_v6 = vmov 3   ;;  %v1367_v7 = vmov 5   ;;  %v1368_v8 = vmov 10   ;;  %v1451_v9 = vld [vmem:[#allocation8] sm:$0xff] }
  0x16   :  { %1142 = vset.pattern.permute.xlu0 %v1364_v2  ;;  %122 = vperm.xlu2 %1144, %v97_v3   ;;  %v1369_v10 = vmov 6   ;;  %v1370_v11 = vmov 7   ;;  %v1460_v12 = vld [vmem:[#allocation8 + $0x8] sm:$0xff]  ;;  %v1371_v13 = vmov 9   ;;  %v1372_v14 = vmov 8   ;;  %v1493_v21 = vld [vmem:[#allocation3] sm:$0xff] }
  0x17   :  { %112 = vperm.xlu1 %1143, %v97_v3   ;;  %101 = vperm.xlu0 %1142, %v97_v3   ;;  %v1373_v15 = vmov 11   ;;  %v2393_v16 = vmov 12   ;;  %v1375_v19 = vmov 19   ;;  %v1376_v22 = vmov 17   ;;  %v1516_v25 = vld [vmem:[#allocation3 + $0x8] sm:$0xff]  ;;  %s1395_s3 = smov [#allocation11]  }
  0x18   :  { %vm2390_vm1 = vmmov 1   ;;  %v2397_v26 = vmov 16   ;;  %v2436_v30 = vmov 0  ;;  %v2396_v34 = vmov 28   ;;  %s1027_s10 = sshll.u32 %s1395_s3, 4  ;;  %s1029_s13 = sshll.u32 %s2380_s4, 4  ;;  %s1028_s10 = int_to_ptr.vmem [resolvable:$true] %s1027_s10  ;;  %s1030_s13 = int_to_ptr.hbm [resolvable:$true] %s1029_s13 }
  0x19   :  { %v2442_v39 = vmov 0  ;;  %v2395_v40 = vmov 27   ;;  %v2444_v42 = vmov 0  ;;  %v2446_v43 = vmov 0 }
  0x1a   :  { %v2394_v47 = vmov 26   ;;  %v2398_v55 = vmov 0.0   ;;  %v2392_v57 = vmov 25   ;;  %v2455_v59 = vmov 0 }
  0x1b   :  { %v2457_v63 = vmov 0  ;;  %v1385_v46 = vmov 20  }
  0x1e   :  { %126 = vperm.xlu2 %1144, %v98_v4  }
  0x1f   :  { %116 = vperm.xlu1 %1143, %v98_v4   ;;  %106 = vperm.xlu0 %1142, %v98_v4  }
  0x26   :  { %1146 = vset.pattern.permute.xlu2 %v1365_v5 }
  0x27   :  { %1145 = vset.pattern.permute.xlu1 %v1366_v6  ;;  %1149 = vset.pattern.permute.xlu0 %v1367_v7 }
  0x28   :  { %142 = vperm.xlu2 %1146, %v97_v3   ;;  %136 = vperm.xlu1 %1145, %v98_v4  }
  0x29   :  { %156 = vperm.xlu0 %1149, %v98_v4  }
  0x30   :  { %1148 = vset.pattern.permute.xlu2 %v1367_v7  ;;  %1147 = vset.pattern.permute.xlu1 %v1365_v5 }
  0x31   :  { %1158 = vset.pattern.permute.xlu0 %v1368_v8  ;;  %152 = vperm.xlu2 %1148, %v97_v3  }
  0x32   :  { %146 = vperm.xlu1 %1147, %v98_v4   ;;  %206 = vperm.xlu0 %1158, %v98_v4  }
  0x39   :  { %1151 = vset.pattern.permute.xlu2 %v1369_v10 }
  0x3a   :  { %1150 = vset.pattern.permute.xlu1 %v1369_v10  ;;  %1163 = vset.pattern.permute.xlu0 %v1363_v1 }
  0x3b   :  { %166 = vperm.xlu2 %1151, %v98_v4   ;;  %162 = vperm.xlu1 %1150, %v97_v3  }
  0x3c   :  { %330 = vperm.xlu0 %1163, %v1451_v9  }
  0x43   :  { %1153 = vset.pattern.permute.xlu2 %v1370_v11  ;;  %1152 = vset.pattern.permute.xlu1 %v1370_v11 }
  0x44   :  { %1164 = vset.pattern.permute.xlu0 %v1366_v6  ;;  %176 = vperm.xlu2 %1153, %v98_v4  }
  0x45   :  { %172 = vperm.xlu1 %1152, %v97_v3   ;;  %132 = vperm.xlu0 %1164, %v97_v3  }
  0x4c   :  { %1155 = vset.pattern.permute.xlu2 %v1371_v13 }
  0x4d   :  { %1154 = vset.pattern.permute.xlu1 %v1372_v14  ;;  %378 = vperm.xlu0 %1164, %v1460_v12  }
  0x4e   :  { %192 = vperm.xlu2 %1155, %v97_v3   ;;  %186 = vperm.xlu1 %1154, %v98_v4  }
  0x55   :  { %1173 = vset.pattern.permute.xlu0 %v1369_v10 }
  0x56   :  { %1157 = vset.pattern.permute.xlu2 %v1368_v8  ;;  %1156 = vset.pattern.permute.xlu1 %v1371_v13 }
  0x57   :  { %440 = vperm.xlu0 %1173, %v1451_v9   ;;  %202 = vperm.xlu2 %1157, %v97_v3  }
  0x58   :  { %196 = vperm.xlu1 %1156, %v98_v4  }
  0x5f   :  { %1174 = vset.pattern.permute.xlu0 %v1372_v14  ;;  %1160 = vset.pattern.permute.xlu2 %v1373_v15 }
  0x60   :  { %1159 = vset.pattern.permute.xlu1 %v1373_v15  ;;  %182 = vperm.xlu0 %1174, %v97_v3  }
  0x61   :  { %216 = vperm.xlu2 %1160, %v98_v4   ;;  %212 = vperm.xlu1 %1159, %v97_v3   ;;  %v1384_v4 = vmov 18  }
  0x68   :  { %488 = vperm.xlu0 %1174, %v1460_v12  }
  0x69   :  { %1162 = vset.pattern.permute.xlu2 %v1364_v2  ;;  %1161 = vset.pattern.permute.xlu1 %v1364_v2 }
  0x6a   :  { %320 = vperm.xlu2 %1162, %v1460_v12   ;;  %315 = vperm.xlu1 %1161, %v1451_v9  }
  0x70   :  { %1183 = vset.pattern.permute.xlu0 %v2393_v16  ;;  %v1476_v17 = vpop.permute.xlu2 %122 }
  0x71   :  { %542 = vperm.xlu0 %1183, %v1451_v9   ;;  %vm2381_vm0 = vcmp.ge.f32.partialorder %v1493_v21, %v1476_v17  ;;  %v327_v50 = vsub.f32 %v1476_v17, %v1493_v21 }
  0x72   :  { %1166 = vset.pattern.permute.xlu2 %v1362_v0  ;;  %1165 = vset.pattern.permute.xlu1 %v1363_v1  ;;  %vm229_vm2 = vmxor %vm2381_vm0, %vm2390_vm1 }
  0x73   :  { %352 = vperm.xlu2 %1166, %v1451_v9   ;;  %334 = vperm.xlu1 %1165, %v1460_v12  }
  0x78   :  { %v1483_v18 = vpop.permute.xlu2 %126 }
  0x79   :  { %1188 = vset.pattern.permute.xlu0 %v1375_v19  ;;  %vm130_vm11 = vcmp.ge.f32.partialorder %v1516_v25, %v1483_v18  ;;  %v328_v29 = vsub.f32 %v1483_v18, %v1516_v25 }
  0x7a   :  { %662 = vperm.xlu0 %1188, %v1451_v9   ;;  %vm230_vm14 = vmxor %vm130_vm11, %vm2390_vm1 }
  0x7b   :  { %1168 = vset.pattern.permute.xlu2 %v1366_v6  ;;  %1167 = vset.pattern.permute.xlu1 %v1362_v0  ;;  %v1386_v6 = vmov 30  }
  0x7c   :  { %374 = vperm.xlu2 %1168, %v1451_v9   ;;  %356 = vperm.xlu1 %1167, %v1460_v12  }
  0x82   :  { %v1491_v20 = vpop.permute.xlu2 %142  ;;  %1192 = vset.pattern.permute.xlu0 %v1376_v22 }
  0x83   :  { %626 = vperm.xlu0 %1192, %v1451_v9   ;;  %vm2382_vm6 = vcmp.ge.f32.partialorder %v1493_v21, %v1491_v20 }
  0x84   :  { %1170 = vset.pattern.permute.xlu2 %v1365_v5  ;;  %1169 = vset.pattern.permute.xlu1 %v1365_v5 }
  0x85   :  { %400 = vperm.xlu2 %1170, %v1460_v12   ;;  %396 = vperm.xlu1 %1169, %v1451_v9  }
  0x89   :  { %v1503_v23 = vpop.permute.xlu1 %112  ;;  %v1511_v24 = vpop.permute.xlu0 %101 }
  0x8a   :  { %vm119_vm3 = vcmp.ge.f32.partialorder %v1493_v21, %v1503_v23  ;;  %vm109_vm5 = vcmp.ge.f32.partialorder %v1493_v21, %v1511_v24  ;;  %v1661_v51 = vsub.f32 %v1493_v21, %v1503_v23 }
  0x8b   :  { %vm221_vm4 = vmxor %vm119_vm3, %vm2390_vm1  ;;  %1195 = vset.pattern.permute.xlu0 %v2397_v26  ;;  %v1525_v28 = vpop.permute.xlu2 %152  ;;  %v1895_v26 = vsub.f32 %v1493_v21, %v1511_v24 }
  0x8c   :  { %vm1521_vm7 = vmand %vm119_vm3, %vm229_vm2  ;;  %608 = vperm.xlu0 %1195, %v1451_v9   ;;  %vm2383_vm9 = vcmp.ge.f32.partialorder %v1493_v21, %v1525_v28  ;;  %2453 = vst [vmem:[#allocation16_spill] sm:$0xff] %v1661_v51 }
  0x8d   :  { %1172 = vset.pattern.permute.xlu2 %v1367_v7  ;;  %vm1529_vm8 = vmand %vm109_vm5, %vm221_vm4  ;;  %1171 = vset.pattern.permute.xlu1 %v1367_v7  ;;  %v1046_v56 = vsel %vm1521_vm7, 1.0, %v2398_v55  ;;  %2488 = vst [vmem:[#allocation24_spill] sm:$0xff] %v1895_v26 }
  0x8e   :  { %422 = vperm.xlu2 %1172, %v1460_v12   ;;  %vm253_vm10 = vmxor %vm2383_vm9, %vm2390_vm1  ;;  %418 = vperm.xlu1 %1171, %v1451_v9  }
  0x8f   :  { %vm1547_vm12 = vmand %vm2382_vm6, %vm253_vm10 }
  0x90   :  { %v2437_v30 = vsel %vm1547_vm12, 4294967295, %v2436_v30 }
  0x91   :  { %v1551_v31 = vpop.permute.xlu1 %116  ;;  %v1559_v32 = vpop.permute.xlu0 %106 }
  0x92   :  { %vm120_vm13 = vcmp.ge.f32.partialorder %v1516_v25, %v1551_v31  ;;  %vm110_vm2 = vcmp.ge.f32.partialorder %v1516_v25, %v1559_v32 }
  0x93   :  { %vm222_vm15 = vmxor %vm120_vm13, %vm2390_vm1 }
  0x94   :  { %vm1564_vm3 = vmand %vm120_vm13, %vm230_vm14  ;;  %1199 = vset.pattern.permute.xlu0 %v2396_v34 }
  0x95   :  { %vm1569_vm4 = vmand %vm110_vm2, %vm222_vm15  ;;  %v1573_v36 = vpop.permute.xlu2 %166  ;;  %778 = vperm.xlu0 %1199, %v1451_v9  }
  0x96   :  { %1176 = vset.pattern.permute.xlu2 %v1370_v11  ;;  %1175 = vset.pattern.permute.xlu1 %v1369_v10  ;;  %vm170_vm5 = vcmp.ge.f32.partialorder %v1516_v25, %v1573_v36  ;;  %v1951_v48 = vsub.f32 %v1573_v36, %v1516_v25 }
  0x97   :  { %462 = vperm.xlu2 %1176, %v1451_v9   ;;  %444 = vperm.xlu1 %1175, %v1460_v12   ;;  %vm262_vm10 = vmxor %vm170_vm5, %vm2390_vm1 }
  0x98   :  { %2493 = vst [vmem:[#allocation28_spill] sm:$0xff] %v1951_v48 }
  0x9a   :  { %v1582_v37 = vpop.permute.xlu1 %136 }
  0x9b   :  { %v1584_v38 = vpop.permute.xlu0 %156  ;;  %vm2384_vm13 = vcmp.ge.f32.partialorder %v1516_v25, %v1582_v37 }
  0x9c   :  { %vm238_vm14 = vmxor %vm2384_vm13, %vm2390_vm1  ;;  %vm160_vm2 = vcmp.ge.f32.partialorder %v1516_v25, %v1584_v38 }
  0x9d   :  { %vm1599_vm15 = vmand %vm130_vm11, %vm238_vm14  ;;  %1203 = vset.pattern.permute.xlu0 %v2395_v40 }
  0x9e   :  { %v2443_v39 = vsel %vm1599_vm15, 4294967295, %v2442_v39  ;;  %760 = vperm.xlu0 %1203, %v1451_v9   ;;  %v1608_v41 = vpop.permute.xlu2 %176  ;;  %vm1611_vm0 = vmand %vm160_vm2, %vm262_vm10  ;;  %vm2470_vm15 = vmmov 1  }
  0x9f   :  { %1178 = vset.pattern.permute.xlu2 %v1372_v14  ;;  %1177 = vset.pattern.permute.xlu1 %v1370_v11  ;;  %v2445_v42 = vsel %vm1611_vm0, 4294967295, %v2444_v42  ;;  %vm2385_vm11 = vcmp.ge.f32.partialorder %v1516_v25, %v1608_v41  ;;  %vm254_vm10 = vmxor %vm160_vm2, %vm2390_vm1  ;;  %vm2454_vm2 = vcmp.ge.f32.partialorder %v1493_v21, %v1525_v28  ;;  %v1777_v14 = vsub.f32 %v1516_v25, %v1559_v32 }
  0xa0   :  { %484 = vperm.xlu2 %1178, %v1451_v9   ;;  %466 = vperm.xlu1 %1177, %v1460_v12   ;;  %vm270_vm14 = vmxor %vm2385_vm11, %vm2390_vm1  ;;  %vm2448_vm11 = vcmp.ge.f32.partialorder %v1516_v25, %v1582_v37 }
  0xa1   :  { %vm1626_vm6 = vmand %vm170_vm5, %vm270_vm14  ;;  %2474 = vst [vmem:[#allocation18_spill] sm:$0xff] %v1777_v14 }
  0xa2   :  { %v2447_v43 = vsel %vm1626_vm6, 4294967295, %v2446_v43 }
  0xa4   :  { %v1630_v44 = vpop.permute.xlu1 %146  ;;  %v1635_v45 = vpop.permute.xlu0 %206 }
  0xa5   :  { %vm150_vm9 = vcmp.ge.f32.partialorder %v1516_v25, %v1630_v44  ;;  %v1766_v10 = vsub.f32 %v1630_v44, %v1516_v25 }
  0xa6   :  { %vm246_vm13 = vmxor %vm150_vm9, %vm2390_vm1  ;;  %1207 = vset.pattern.permute.xlu0 %v2394_v47 }
  0xa7   :  { %vm1641_vm12 = vmand %vm2448_vm11, %vm246_vm13  ;;  %742 = vperm.xlu0 %1207, %v1451_v9   ;;  %2471 = vst [vmem:[#allocation17_spill] sm:$0xff] %v1766_v10 }
  0xa8   :  { %vm1646_vm5 = vmand %vm150_vm9, %vm254_vm10  ;;  %1180 = vset.pattern.permute.xlu2 %v1371_v13  ;;  %v1652_v49 = vpop.permute.xlu2 %192  ;;  %1179 = vset.pattern.permute.xlu1 %v1371_v13  ;;  %v1051_v27 = vsel %vm1641_vm12, 1.0, %v2398_v55 }
  0xa9   :  { %510 = vperm.xlu2 %1180, %v1460_v12   ;;  %506 = vperm.xlu1 %1179, %v1451_v9   ;;  %vm2388_vm7 = vcmp.ge.f32.partialorder %v1493_v21, %v1652_v49  ;;  %v519_v32 = vsub.f32 %v1493_v21, %v1652_v49 }
  0xad   :  { %v1663_v52 = vpop.permute.xlu1 %162 }
  0xae   :  { %v331_v53 = vpop.permute.xlu0 %330  ;;  %vm2386_vm9 = vcmp.ge.f32.partialorder %v1493_v21, %v1663_v52 }
  0xaf   :  { %v337_v54 = vmul.f32 %v331_v53, %v327_v50  ;;  %vm261_vm13 = vmxor %vm2386_vm9, %vm2390_vm1  ;;  %1212 = vset.pattern.permute.xlu0 %v2392_v57  ;;  %v345_v58 = vmul.f32 %v1661_v51, %v331_v53 }
  0xb0   :  { %vm1679_vm11 = vmand %vm2454_vm2, %vm261_vm13  ;;  %724 = vperm.xlu0 %1212, %v1451_v9   ;;  %vm2459_vm2 = vcmp.ge.f32.partialorder %v1493_v21, %v1491_v20 }
  0xb1   :  { %v2456_v59 = vsel %vm1679_vm11, 4294967295, %v2455_v59  ;;  %v1683_v60 = vmul.f32 %v1046_v56, %v337_v54  ;;  %1182 = vset.pattern.permute.xlu2 %v1368_v8  ;;  %v1689_v61 = vmul.f32 %v1046_v56, %v345_v58  ;;  %1181 = vset.pattern.permute.xlu1 %v1368_v8  ;;  %v1693_v62 = vpop.permute.xlu2 %202  ;;  %vm1715_vm9 = vmxor %vm2459_vm2, %vm2390_vm1  ;;  %v1762_v8 = vsub.f32 %v1516_v25, %v1582_v37 }
  0xb2   :  { %532 = vperm.xlu2 %1182, %v1460_v12   ;;  %528 = vperm.xlu1 %1181, %v1451_v9   ;;  %vm2387_vm14 = vcmp.ge.f32.partialorder %v1493_v21, %v1693_v62  ;;  %v1045_v58 = vsel %vm1569_vm4, 1.0, %v2398_v55 }
  0xb3   :  { %vm293_vm10 = vmxor %vm2387_vm14, %vm2390_vm1 }
  0xb4   :  { %vm1705_vm13 = vmand %vm2388_vm7, %vm293_vm10 }
  0xb5   :  { %v2458_v63 = vsel %vm1705_vm13, 4294967295, %v2457_v63  ;;  %vm2462_vm13 = vcmp.ge.f32.partialorder %v1493_v21, %v1663_v52 }
  0xb7   :  { %v1709_v0 = vpop.permute.xlu1 %172  ;;  %v1721_v2 = vpop.permute.xlu0 %132 }
  0xb8   :  { %vm2389_vm14 = vcmp.ge.f32.partialorder %v1493_v21, %v1709_v0  ;;  %vm139_vm7 = vcmp.ge.f32.partialorder %v1493_v21, %v1721_v2  ;;  %v1864_v47 = vsub.f32 %v1493_v21, %v1721_v2 }
  0xb9   :  { %vm269_vm10 = vmxor %vm2389_vm14, %vm2390_vm1  ;;  %vm2465_vm14 = vcmp.ge.f32.partialorder %v1493_v21, %v1476_v17 }
  0xba   :  { %vm1732_vm2 = vmand %vm2462_vm13, %vm269_vm10  ;;  %1185 = vset.pattern.permute.xlu2 %v1375_v19  ;;  %1184 = vset.pattern.permute.xlu1 %v1384_v4  ;;  %2483 = vst [vmem:[#allocation22_spill] sm:$0xff] %v1864_v47 }
  0xbb   :  { %vm237_vm6 = vmxor %vm139_vm7, %vm2390_vm1  ;;  %666 = vperm.xlu2 %1185, %v1460_v12   ;;  %v1739_v5 = vpop.permute.xlu2 %216  ;;  %648 = vperm.xlu1 %1184, %v1460_v12   ;;  %vm210_vm1 = vcmp.ge.f32.partialorder %v1516_v25, %v1635_v45 }
  0xbc   :  { %vm1744_vm11 = vmand %vm2465_vm14, %vm237_vm6  ;;  %vm220_vm13 = vcmp.ge.f32.partialorder %v1516_v25, %v1739_v5 }
  0xbd   :  { %vm1753_vm10 = vmand %vm139_vm7, %vm1715_vm9  ;;  %vm2475_vm7 = vcmp.ge.f32.partialorder %v1516_v25, %v1608_v41 }
  0xbe   :  { %vm302_vm0 = vmxor %vm220_vm13, %vm2470_vm15 }
  0xbf   :  { %vm1771_vm6 = vmand %vm210_vm1, %vm302_vm0  ;;  %v379_v13 = vpop.permute.xlu0 %378 }
  0xc0   :  { %v382_v15 = vmul.f32 %v379_v13, %v1766_v10  ;;  %v390_v19 = vmul.f32 %v1762_v8, %v379_v13  ;;  %v1781_v23 = vpop.permute.xlu1 %186  ;;  %v1817_v13 = vsub.f32 %v1709_v0, %v1493_v21 }
  0xc1   :  { %vm190_vm0 = vcmp.ge.f32.partialorder %v1516_v25, %v1781_v23 }
  0xc2   :  { %v1788_v50 = vmul.f32 %v1051_v27, %v382_v15  ;;  %v1790_v53 = vmul.f32 %v1051_v27, %v390_v19  ;;  %vm278_vm9 = vmxor %vm190_vm0, %vm2470_vm15  ;;  %v1821_v19 = vsub.f32 %v1721_v2, %v1493_v21 }
  0xc3   :  { %1187 = vset.pattern.permute.xlu2 %v1384_v4  ;;  %vm1799_vm14 = vmand %vm2475_vm7, %vm278_vm9  ;;  %1186 = vset.pattern.permute.xlu1 %v1385_v46  ;;  %v1813_v4 = vsub.f32 %v1493_v21, %v1663_v52 }
  0xc4   :  { %644 = vperm.xlu2 %1187, %v1451_v9   ;;  %v321_v54 = vpop.permute.xlu2 %320  ;;  %684 = vperm.xlu1 %1186, %v1460_v12   ;;  %2478 = vst [vmem:[#allocation19_spill] sm:$0xff] %v1821_v19 }
  0xc5   :  { %v324_v56 = vmul.f32 %v321_v54, %v1777_v14  ;;  %v1056_v54 = vsel %vm1732_vm2, 1.0, %v2398_v55  ;;  %v1907_v14 = vsub.f32 %v1584_v38, %v1516_v25 }
  0xc7   :  { %v1809_v1 = vmul.f32 %v1045_v58, %v324_v56  ;;  %v1834_v56 = vsub.f32 %v1493_v21, %v1476_v17 }
  0xc9   :  { %v441_v15 = vpop.permute.xlu0 %440  ;;  %2479 = vst [vmem:[#allocation20_spill] sm:$0xff] %v1834_v56 }
  0xca   :  { %v447_v27 = vmul.f32 %v441_v15, %v1817_v13  ;;  %v455_v35 = vmul.f32 %v1813_v4, %v441_v15  ;;  %v1825_v46 = vpop.permute.xlu1 %196 }
  0xcb   :  { %vm200_vm12 = vcmp.ge.f32.partialorder %v1516_v25, %v1825_v46 }
  0xcc   :  { %v1836_v58 = vmul.f32 %v1056_v54, %v447_v27  ;;  %v1838_v57 = vmul.f32 %v1056_v54, %v455_v35  ;;  %vm286_vm4 = vmxor %vm200_vm12, %vm2470_vm15  ;;  %1189 = vset.pattern.permute.xlu2 %v1376_v22  ;;  %680 = vperm.xlu1 %1186, %v1451_v9   ;;  %v1048_v22 = vsel %vm1744_vm11, 1.0, %v2398_v55 }
  0xcd   :  { %vm1848_vm2 = vmand %vm190_vm0, %vm286_vm4  ;;  %630 = vperm.xlu2 %1189, %v1460_v12   ;;  %v353_v17 = vpop.permute.xlu2 %352  ;;  %vm2485_vm0 = vcmp.ge.f32.partialorder %v1493_v21, %v1693_v62  ;;  %vm2502_vm4 = vnez %v2443_v39  ;;  %v2016_v39 = vsub.f32 %v1493_v21, %v1491_v20 }
  0xce   :  { %v359_v15 = vmul.f32 %v353_v17, %v1821_v19  ;;  %v367_v27 = vmul.f32 %v1834_v56, %v353_v17  ;;  %v1872_v17 = vsub.f32 %v1491_v20, %v1493_v21  ;;  %v1918_v56 = vsub.f32 %v1516_v25, %v1630_v44 }
  0xcf   :  { %v2034_v20 = vsub.f32 %v1652_v49, %v1493_v21 }
  0xd0   :  { %v361_v35 = vmul.f32 %v1048_v22, %v359_v15  ;;  %v369_v54 = vmul.f32 %v1048_v22, %v367_v27  ;;  %2484 = vst [vmem:[#allocation23_spill] sm:$0xff] %v1872_v17  ;;  %v1387_v15 = vmov 31   ;;  %v1050_v22 = vsel %vm1753_vm10, 1.0, %v2398_v55 }
  0xd1   :  { %2491 = vst [vmem:[#allocation26_spill] sm:$0xff] %v1918_v56  ;;  %vm2501_vm10 = vcmp.ge.f32.partialorder %v1493_v21, %v1709_v0 }
  0xd2   :  { %v1860_v16 = vadd.f32 %v361_v35, %v1689_v61  ;;  %v1866_v40 = vpop.permute.xlu0 %182 }
  0xd3   :  { %v1868_v34 = vpop.permute.xlu1 %212 }
  0xd4   :  { %2482 = vst [vmem:[#allocation21_spill] sm:$0xff] %v1860_v16  ;;  %vm219_vm11 = vcmp.ge.f32.partialorder %v1493_v21, %v1868_v34  ;;  %1190 = vset.pattern.permute.xlu1 %v1386_v6 }
  0xd5   :  { %1191 = vset.pattern.permute.xlu2 %v1387_v15  ;;  %818 = vperm.xlu1 %1190, %v1460_v12   ;;  %vm301_vm13 = vmxor %vm219_vm11, %vm2470_vm15 }
  0xd6   :  { %836 = vperm.xlu2 %1191, %v1460_v12   ;;  %v375_v61 = vpop.permute.xlu2 %374  ;;  %vm1887_vm9 = vmand %vm2485_vm0, %vm301_vm13  ;;  %vm2508_vm0 = vnez %v2437_v30 }
  0xd7   :  { %v381_v2 = vmul.f32 %v375_v61, %v1872_v17  ;;  %v389_v27 = vmul.f32 %v1864_v47, %v375_v61  ;;  %v1899_v61 = vsub.f32 %v1825_v46, %v1516_v25 }
  0xd9   :  { %v383_v6 = vmul.f32 %v1050_v22, %v381_v2  ;;  %v1891_v15 = vmul.f32 %v1050_v22, %v389_v27  ;;  %v2490_v27 = vmov 0.0  }
  0xda   :  { %v1901_v7 = vpop.permute.xlu0 %488  ;;  %v1914_v24 = vsel %vm1848_vm2, 1.0, %v2490_v27  ;;  %v1044_v3 = vsel %vm1529_vm8, 1.0, %v2490_v27  ;;  %vm189_vm8 = vcmp.ge.f32.partialorder %v1493_v21, %v1866_v40  ;;  %vm2506_vm2 = vcmp.ge.f32.partialorder %v1493_v21, %v1652_v49 }
  0xdb   :  { %v1903_v55 = vadd.f32 %v383_v6, %v369_v54  ;;  %v492_v2 = vmul.f32 %v1901_v7, %v1899_v61  ;;  %vm285_vm11 = vmxor %vm2506_vm2, %vm2470_vm15 }
  0xdc   :  { %v316_v22 = vpop.permute.xlu1 %315  ;;  %vm287_vm13 = vmand %vm189_vm8, %vm285_vm11 }
  0xdd   :  { %2489 = vst [vmem:[#allocation25_spill] sm:$0xff] %v1903_v55  ;;  %v1921_v54 = vmul.f32 %v1914_v24, %v492_v2  ;;  %v323_v6 = vmul.f32 %v316_v22, %v1895_v26  ;;  %814 = vperm.xlu1 %1190, %v1451_v9   ;;  %v1053_v2 = vsel %vm1646_vm5, 1.0, %v2490_v27  ;;  %vm2496_vm5 = vnez %v2445_v42 }
  0xde   :  { %832 = vperm.xlu2 %1191, %v1451_v9   ;;  %v1992_v42 = vsub.f32 %v1866_v40, %v1493_v21 }
  0xdf   :  { %v401_v55 = vpop.permute.xlu2 %400  ;;  %v325_v17 = vmul.f32 %v1044_v3, %v323_v6  ;;  %v1942_v6 = vsub.f32 %v1516_v25, %v1551_v31 }
  0xe0   :  { %v404_v16 = vmul.f32 %v401_v55, %v1907_v14  ;;  %v412_v44 = vmul.f32 %v1918_v56, %v401_v55  ;;  %v1946_v55 = vsub.f32 %v1516_v25, %v1584_v38  ;;  %v1047_v38 = vsel %vm1564_vm3, 1.0, %v2490_v27  ;;  %vm277_vm3 = vmxor %vm189_vm8, %vm2470_vm15 }
  0xe1   :  { %v341_v19 = vadd.f32 %v1683_v60, %v325_v17  ;;  %2492 = vst [vmem:[#allocation27_spill] sm:$0xff] %v1942_v6  ;;  %v2494_v60 = vmov 16   ;;  %vm279_vm7 = vmand %vm2501_vm10, %vm277_vm3 }
  0xe2   :  { %v406_v51 = vmul.f32 %v1053_v2, %v404_v16  ;;  %v414_v22 = vmul.f32 %v1053_v2, %v412_v44  ;;  %vm294_vm8 = vmxor %vm210_vm1, %vm2470_vm15  ;;  %vm2512_vm15 = vnez %v2456_v59 }
  0xe3   :  { %v543_v10 = vpop.permute.xlu0 %542  ;;  %vm296_vm1 = vmand %vm200_vm12, %vm294_vm8  ;;  %vm2513_vm12 = vnez %v2447_v43  ;;  %v2150_v43 = vsub.f32 %v1781_v23, %v1516_v25 }
  0xe4   :  { %v1936_v47 = vadd.f32 %v406_v51, %v1790_v53  ;;  %v549_v16 = vmul.f32 %v543_v10, %v1895_v26  ;;  %v1388_v53 = vmov 29  }
  0xe5   :  { %1193 = vset.pattern.permute.xlu1 %v2494_v60  ;;  %v335_v51 = vpop.permute.xlu1 %334 }
  0xe6   :  { %1194 = vset.pattern.permute.xlu2 %v1388_v53  ;;  %v1954_v17 = vmul.f32 %v549_v16, %v341_v19  ;;  %v338_v3 = vmul.f32 %v335_v51, %v328_v29  ;;  %v346_v31 = vmul.f32 %v1942_v6, %v335_v51  ;;  %612 = vperm.xlu1 %1193, %v1460_v12   ;;  %v1055_v19 = vsel %vm2496_vm5, 1.0, %v2490_v27 }
  0xe7   :  { %800 = vperm.xlu2 %1194, %v1460_v12  }
  0xe8   :  { %2495 = vst [vmem:[#allocation29_spill] sm:$0xff] %v1954_v17  ;;  %v423_v10 = vpop.permute.xlu2 %422  ;;  %v340_v44 = vmul.f32 %v1047_v38, %v338_v3  ;;  %v348_v2 = vmul.f32 %v1047_v38, %v346_v31  ;;  %v1984_v31 = vsub.f32 %v1516_v25, %v1483_v18  ;;  %v1389_v38 = vmov 15  }
  0xe9   :  { %v426_v60 = vmul.f32 %v423_v10, %v1951_v48  ;;  %v434_v26 = vmul.f32 %v1946_v55, %v423_v10 }
  0xea   :  { %v1972_v33 = vadd.f32 %v340_v44, %v1809_v1  ;;  %2499 = vst [vmem:[#allocation32_spill] sm:$0xff] %v1984_v31 }
  0xeb   :  { %v428_v29 = vmul.f32 %v1055_v19, %v426_v60  ;;  %v1969_v16 = vmul.f32 %v1055_v19, %v434_v26  ;;  %v1988_v26 = vsub.f32 %v1582_v37, %v1516_v25  ;;  %v1049_v37 = vsel %vm2502_vm4, 1.0, %v2490_v27 }
  0xec   :  { %2497 = vst [vmem:[#allocation30_spill] sm:$0xff] %v1972_v33  ;;  %v1978_v51 = vpop.permute.xlu0 %662  ;;  %v1058_v19 = vsel %vm279_vm7, 1.0, %v2490_v27 }
  0xed   :  { %v1980_v3 = vadd.f32 %v428_v29, %v414_v22  ;;  %2500 = vst [vmem:[#allocation33_spill] sm:$0xff] %v1988_v26 }
  0xee   :  { %1196 = vset.pattern.permute.xlu1 %v1388_v53  ;;  %v357_v1 = vpop.permute.xlu1 %356 }
  0xef   :  { %2498 = vst [vmem:[#allocation31_spill] sm:$0xff] %v1980_v3  ;;  %1197 = vset.pattern.permute.xlu2 %v1389_v38  ;;  %v360_v22 = vmul.f32 %v357_v1, %v1988_v26  ;;  %v368_v18 = vmul.f32 %v1984_v31, %v357_v1  ;;  %796 = vperm.xlu1 %1196, %v1451_v9  }
  0xf0   :  { %594 = vperm.xlu2 %1197, %v1460_v12  }
  0xf1   :  { %v463_v53 = vpop.permute.xlu2 %462  ;;  %v362_v10 = vmul.f32 %v1049_v37, %v360_v22  ;;  %v370_v44 = vmul.f32 %v1049_v37, %v368_v18  ;;  %v2020_v22 = vsub.f32 %v1525_v28, %v1493_v21  ;;  %v2024_v18 = vsub.f32 %v1493_v21, %v1709_v0 }
  0xf2   :  { %v469_v60 = vmul.f32 %v463_v53, %v1992_v42 }
  0xf3   :  { %v2007_v38 = vadd.f32 %v1788_v50, %v370_v44  ;;  %v2009_v1 = vadd.f32 %v362_v10, %v348_v2  ;;  %2505 = vst [vmem:[#allocation36_spill] sm:$0xff] %v2020_v22  ;;  %v2507_v50 = vmov 28   ;;  %v477_v0 = vmul.f32 %v2024_v18, %v463_v53 }
  0xf4   :  { %v471_v29 = vmul.f32 %v1058_v19, %v469_v60  ;;  %v1052_v10 = vsel %vm2508_vm0, 1.0, %v2490_v27  ;;  %v2059_v53 = vsub.f32 %v1516_v25, %v1781_v23 }
  0xf5   :  { %2503 = vst [vmem:[#allocation34_spill] sm:$0xff] %v2007_v38  ;;  %v627_v6 = vpop.permute.xlu0 %626  ;;  %v479_v30 = vmul.f32 %v1058_v19, %v477_v0  ;;  %v2073_v38 = vsub.f32 %v1493_v21, %v1525_v28  ;;  %v2077_v19 = vsub.f32 %v1635_v45, %v1516_v25  ;;  %v1390_v0 = vmov 14  }
  0xf6   :  { %2504 = vst [vmem:[#allocation35_spill] sm:$0xff] %v2009_v1  ;;  %v2012_v26 = vadd.f32 %v471_v29, %v1838_v57  ;;  %v2051_v1 = vsel %vm287_vm13, 1.0, %v2490_v27  ;;  %v520_v45 = vsub.f32 %v1516_v25, %v1825_v46  ;;  %v633_v56 = vmul.f32 %v627_v6, %v1817_v13 }
  0xf7   :  { %1198 = vset.pattern.permute.xlu1 %v2507_v50  ;;  %v397_v57 = vpop.permute.xlu1 %396 }
  0xf8   :  { %590 = vperm.xlu2 %1197, %v1451_v9   ;;  %v403_v2 = vmul.f32 %v397_v57, %v2020_v22  ;;  %v411_v37 = vmul.f32 %v2016_v39, %v397_v57  ;;  %782 = vperm.xlu1 %1198, %v1460_v12   ;;  %v1391_v22 = vmov 32  }
  0xf9   :  { %1215 = vset.pattern.permute.xlu0 %v1391_v22 }
  0xfa   :  { %v2046_v44 = vpop.permute.xlu2 %484  ;;  %v405_v60 = vmul.f32 %v1052_v10, %v403_v2  ;;  %v413_v29 = vmul.f32 %v1052_v10, %v411_v37  ;;  %v500_v37 = vmul.f32 %v2059_v53, %v1901_v7  ;;  %v669_v10 = vmul.f32 %v1978_v51, %v2034_v20 }
  0xfb   :  { %v491_v50 = vmul.f32 %v2046_v44, %v2034_v20  ;;  %v2511_v7 = vmov 27  }
  0xfc   :  { %v2063_v2 = vadd.f32 %v405_v60, %v1891_v15  ;;  %v2081_v15 = vsub.f32 %v1663_v52, %v1493_v21 }
  0xfd   :  { %v493_v57 = vmul.f32 %v2051_v1, %v491_v50 }
  0xfe   :  { %2509 = vst [vmem:[#allocation37_spill] sm:$0xff] %v2063_v2  ;;  %v609_v17 = vpop.permute.xlu0 %608 }
  0xff   :  { %v2069_v33 = vadd.f32 %v493_v57, %v479_v30  ;;  %2510 = vst [vmem:[#allocation38_spill] sm:$0xff] %v2081_v15  ;;  %v502_v30 = vmul.f32 %v1914_v24, %v500_v37  ;;  %v1054_v57 = vsel %vm2512_vm15, 1.0, %v2490_v27  ;;  %v621_v48 = vmul.f32 %v609_v17, %v2016_v39 }
 0x100   :  { %1201 = vset.pattern.permute.xlu2 %v2511_v7  ;;  %1200 = vset.pattern.permute.xlu1 %v1390_v0  ;;  %v419_v60 = vpop.permute.xlu1 %418  ;;  %v1063_v0 = vsel %vm296_vm1, 1.0, %v2490_v27 }
 0x101   :  { %764 = vperm.xlu2 %1201, %v1460_v12   ;;  %v2089_v28 = vmul.f32 %v669_v10, %v2069_v33  ;;  %v425_v52 = vmul.f32 %v419_v60, %v2081_v15  ;;  %v433_v50 = vmul.f32 %v2073_v38, %v419_v60  ;;  %576 = vperm.xlu1 %1200, %v1460_v12  }
 0x102   :  { %v615_v60 = vmul.f32 %v609_v17, %v2081_v15 }
 0x103   :  { %v511_v7 = vpop.permute.xlu2 %510  ;;  %v427_v10 = vmul.f32 %v1054_v57, %v425_v52  ;;  %v435_v31 = vmul.f32 %v1054_v57, %v433_v50  ;;  %v2109_v52 = vsub.f32 %v1516_v25, %v1573_v36 }
 0x104   :  { %v514_v3 = vmul.f32 %v511_v7, %v2077_v19  ;;  %v522_v46 = vmul.f32 %v520_v45, %v511_v7  ;;  %v639_v45 = vmul.f32 %v627_v6, %v2073_v38 }
 0x105   :  { %v429_v2 = vadd.f32 %v427_v10, %v413_v29  ;;  %v451_v24 = vadd.f32 %v1836_v58, %v435_v31  ;;  %v2118_v58 = vsub.f32 %v1608_v41, %v1516_v25  ;;  %v1392_v29 = vmov 21  }
 0x106   :  { %v516_v37 = vmul.f32 %v1063_v0, %v514_v3  ;;  %v524_v59 = vmul.f32 %v1063_v0, %v522_v46 }
 0x107   :  { %v779_v50 = vpop.permute.xlu0 %778  ;;  %v623_v57 = vmul.f32 %v621_v48, %v429_v2  ;;  %v635_v7 = vmul.f32 %v633_v56, %v451_v24  ;;  %v2114_v17 = vmul.f32 %v615_v60, %v429_v2  ;;  %v641_v36 = vmul.f32 %v639_v45, %v451_v24 }
 0x108   :  { %v2112_v15 = vadd.f32 %v516_v37, %v502_v30  ;;  %v785_v3 = vmul.f32 %v779_v50, %v1817_v13  ;;  %v791_v31 = vmul.f32 %v779_v50, %v2016_v39  ;;  %v2126_v56 = vsub.f32 %v1739_v5, %v1516_v25 }
 0x109   :  { %1202 = vset.pattern.permute.xlu2 %v1392_v29  ;;  %v637_v0 = vadd.f32 %v635_v7, %v623_v57  ;;  %572 = vperm.xlu1 %1200, %v1451_v9   ;;  %v445_v6 = vpop.permute.xlu1 %444  ;;  %v1057_v30 = vsel %vm2513_vm12, 1.0, %v2490_v27  ;;  %v1065_v5 = vsel %vm1771_vm6, 1.0, %v2490_v27  ;;  %v2146_v57 = vsub.f32 %v1516_v25, %v1608_v41 }
 0x10a   :  { %702 = vperm.xlu2 %1202, %v1460_v12   ;;  %v448_v48 = vmul.f32 %v445_v6, %v2118_v58  ;;  %v456_v2 = vmul.f32 %v2109_v52, %v445_v6  ;;  %v1393_v7 = vmov 13   ;;  %v1059_v25 = vsel %vm1799_vm14, 1.0, %v2490_v27 }
 0x10b   :  { %v2130_v13 = vmul.f32 %v785_v3, %v637_v0  ;;  %v2132_v39 = vmul.f32 %v791_v31, %v637_v0  ;;  %vm2515_vm6 = vnez %v2458_v63  ;;  %v2194_v63 = vsub.f32 %v1868_v34, %v1493_v21 }
 0x10c   :  { %v533_v10 = vpop.permute.xlu2 %532  ;;  %v450_v46 = vmul.f32 %v1057_v30, %v448_v48  ;;  %v458_v60 = vmul.f32 %v1057_v30, %v456_v2  ;;  %v1062_v49 = vsel %vm2515_vm6, 1.0, %v2490_v27 }
 0x10d   :  { %v536_v24 = vmul.f32 %v533_v10, %v2126_v56  ;;  %v2172_v10 = vsub.f32 %v1693_v62, %v1493_v21 }
 0x10e   :  { %v452_v45 = vadd.f32 %v450_v46, %v1969_v16  ;;  %v2514_v46 = vmov 26  }
 0x10f   :  { %v538_v37 = vmul.f32 %v1065_v5, %v536_v24 }
 0x111   :  { %v2142_v50 = vadd.f32 %v538_v37, %v524_v59  ;;  %1204 = vset.pattern.permute.xlu1 %v1393_v7  ;;  %v2158_v59 = vsub.f32 %v1493_v21, %v1866_v40 }
 0x112   :  { %698 = vperm.xlu2 %1202, %v1451_v9   ;;  %558 = vperm.xlu1 %1204, %v1460_v12   ;;  %v467_v11 = vpop.permute.xlu1 %466 }
 0x113   :  { %v470_v3 = vmul.f32 %v467_v11, %v2150_v43  ;;  %v478_v16 = vmul.f32 %v2146_v57, %v467_v11  ;;  %v499_v2 = vmul.f32 %v2158_v59, %v2046_v44 }
 0x115   :  { %v667_v41 = vpop.permute.xlu2 %666  ;;  %v472_v23 = vmul.f32 %v1059_v25, %v470_v3  ;;  %v480_v31 = vmul.f32 %v1059_v25, %v478_v16  ;;  %v501_v24 = vmul.f32 %v2051_v1, %v499_v2 }
 0x116   :  { %v670_v29 = vmul.f32 %v667_v41, %v1899_v61  ;;  %v676_v0 = vmul.f32 %v667_v41, %v2146_v57  ;;  %v2516_v41 = vmov 12  }
 0x117   :  { %v496_v6 = vadd.f32 %v1921_v54, %v480_v31  ;;  %v474_v48 = vadd.f32 %v472_v23, %v458_v60 }
 0x119   :  { %v672_v30 = vmul.f32 %v670_v29, %v496_v6  ;;  %v678_v40 = vmul.f32 %v676_v0, %v496_v6 }
 0x11a   :  { %1206 = vset.pattern.permute.xlu2 %v1393_v7  ;;  %1205 = vset.pattern.permute.xlu1 %v2514_v46 }
 0x11b   :  { %554 = vperm.xlu2 %1206, %v1451_v9   ;;  %746 = vperm.xlu1 %1205, %v1460_v12   ;;  %v507_v54 = vpop.permute.xlu1 %506 }
 0x11c   :  { %v513_v60 = vmul.f32 %v507_v54, %v2172_v10  ;;  %v521_v44 = vmul.f32 %v519_v32, %v507_v54  ;;  %v2517_v32 = vmov 25  }
 0x11e   :  { %v645_v5 = vpop.permute.xlu2 %644  ;;  %v515_v37 = vmul.f32 %v1062_v49, %v513_v60  ;;  %v523_v62 = vmul.f32 %v1062_v49, %v521_v44 }
 0x11f   :  { %v651_v7 = vmul.f32 %v645_v5, %v1992_v42  ;;  %v657_v11 = vmul.f32 %v645_v5, %v1813_v4  ;;  %v1394_v5 = vmov 24  }
 0x120   :  { %v517_v25 = vadd.f32 %v515_v37, %v501_v24 }
 0x121   :  { %v653_v3 = vmul.f32 %v651_v7, %v2012_v26  ;;  %v659_v16 = vmul.f32 %v657_v11, %v2012_v26 }
 0x123   :  { %1209 = vset.pattern.permute.xlu2 %v2516_v41  ;;  %v2188_v1 = vadd.f32 %v2089_v28, %v659_v16  ;;  %v2190_v23 = vadd.f32 %v653_v3, %v641_v36  ;;  %1208 = vset.pattern.permute.xlu1 %v1391_v22  ;;  %v1064_v28 = vsel %vm1887_vm9, 1.0, %v2490_v27  ;;  %v675_v3 = vmul.f32 %v1978_v51, %v2024_v18 }
 0x124   :  { %546 = vperm.xlu2 %1209, %v1460_v12   ;;  %854 = vperm.xlu1 %1208, %v1460_v12   ;;  %v529_v31 = vpop.permute.xlu1 %528 }
 0x125   :  { %v535_v26 = vmul.f32 %v529_v31, %v2194_v63  ;;  %v677_v41 = vmul.f32 %v675_v3, %v2069_v33 }
 0x127   :  { %v631_v29 = vpop.permute.xlu2 %630  ;;  %v537_v36 = vmul.f32 %v1064_v28, %v535_v26 }
 0x128   :  { %v634_v0 = vmul.f32 %v631_v29, %v2118_v58  ;;  %v640_v21 = vmul.f32 %v631_v29, %v1946_v55 }
 0x129   :  { %v2207_v2 = vadd.f32 %v537_v36, %v523_v62 }
 0x12a   :  { %v2205_v34 = vmul.f32 %v634_v0, %v452_v45  ;;  %v642_v6 = vmul.f32 %v640_v21, %v452_v45 }
 0x12c   :  { %1211 = vset.pattern.permute.xlu2 %v1391_v22  ;;  %1210 = vset.pattern.permute.xlu1 %v2517_v32 }
 0x12d   :  { %850 = vperm.xlu2 %1211, %v1451_v9   ;;  %728 = vperm.xlu1 %1210, %v1460_v12   ;;  %v649_v35 = vpop.permute.xlu1 %648 }
 0x12e   :  { %v652_v27 = vmul.f32 %v649_v35, %v2150_v43  ;;  %v658_v46 = vmul.f32 %v649_v35, %v2109_v52 }
 0x130   :  { %v837_v54 = vpop.permute.xlu2 %836  ;;  %v654_v60 = vmul.f32 %v652_v27, %v474_v48  ;;  %v660_v44 = vmul.f32 %v658_v46, %v474_v48 }
 0x131   :  { %v846_v45 = vmul.f32 %v837_v54, %v2146_v57  ;;  %v840_v33 = vmul.f32 %v837_v54, %v2077_v19 }
 0x132   :  { %v656_v24 = vadd.f32 %v654_v60, %v642_v6  ;;  %v674_v49 = vadd.f32 %v672_v30, %v660_v44 }
 0x135   :  { %1214 = vset.pattern.permute.xlu2 %v1394_v5  ;;  %1213 = vset.pattern.permute.xlu1 %v1394_v5  ;;  %v2518_v5 = vld [vmem:[#allocation36_spill] sm:$0xff] }
 0x136   :  { %712 = vperm.xlu2 %1214, %v1451_v9   ;;  %716 = vperm.xlu1 %1213, %v1460_v12   ;;  %v685_v22 = vpop.permute.xlu1 %684 }
 0x137   :  { %v688_v37 = vmul.f32 %v685_v22, %v2077_v19  ;;  %v694_v62 = vmul.f32 %v685_v22, %v2059_v53 }
 0x138   :  { %v833_v7 = vpop.permute.xlu2 %832 }
 0x139   :  { %v690_v11 = vmul.f32 %v688_v37, %v2112_v15  ;;  %v2222_v48 = vmul.f32 %v694_v62, %v2112_v15  ;;  %v839_v28 = vmul.f32 %v833_v7, %v2172_v10  ;;  %v845_v29 = vmul.f32 %v833_v7, %v2024_v18  ;;  %v2519_v37 = vld [vmem:[#allocation22_spill] sm:$0xff]  ;;  %v2520_v7 = vld [vmem:[#allocation37_spill] sm:$0xff] }
 0x13b   :  { %v692_v57 = vadd.f32 %v690_v11, %v678_v40 }
 0x13d   :  { %v2224_v30 = vmul.f32 %v846_v45, %v692_v57 }
 0x13e   :  { %v681_v9 = vpop.permute.xlu1 %680 }
 0x13f   :  { %v687_v12 = vmul.f32 %v681_v9, %v2172_v10  ;;  %v693_v16 = vmul.f32 %v681_v9, %v2158_v59  ;;  %v2521_v9 = vld [vmem:[#allocation38_spill] sm:$0xff] }
 0x141   :  { %v801_v53 = vpop.permute.xlu2 %800  ;;  %v689_v31 = vmul.f32 %v687_v12, %v517_v25  ;;  %v2231_v26 = vmul.f32 %v693_v16, %v517_v25 }
 0x142   :  { %v804_v15 = vmul.f32 %v801_v53, %v2150_v43  ;;  %v810_v40 = vmul.f32 %v801_v53, %v1946_v55  ;;  %v842_v55 = vmul.f32 %v840_v33, %v692_v57  ;;  %v2522_v53 = vld [vmem:[#allocation28_spill] sm:$0xff] }
 0x143   :  { %v691_v51 = vadd.f32 %v689_v31, %v677_v41 }
 0x144   :  { %v2237_v36 = vmul.f32 %v804_v15, %v656_v24  ;;  %v812_v0 = vmul.f32 %v810_v40, %v656_v24  ;;  %v2523_v15 = vld [vmem:[#allocation26_spill] sm:$0xff] }
 0x145   :  { %v841_v21 = vmul.f32 %v839_v28, %v691_v51  ;;  %v2239_v59 = vmul.f32 %v845_v29, %v691_v51  ;;  %v2524_v51 = vld [vmem:[#allocation31_spill] sm:$0xff] }
 0x147   :  { %v819_v6 = vpop.permute.xlu1 %818 }
 0x148   :  { %v822_v25 = vmul.f32 %v819_v6, %v1899_v61  ;;  %v828_v43 = vmul.f32 %v819_v6, %v2109_v52 }
 0x14a   :  { %v595_v32 = vpop.permute.xlu2 %594  ;;  %v824_v35 = vmul.f32 %v822_v25, %v674_v49  ;;  %v830_v10 = vmul.f32 %v828_v43, %v674_v49 }
 0x14b   :  { %v598_v18 = vmul.f32 %v595_v32, %v1907_v14  ;;  %v604_v27 = vmul.f32 %v595_v32, %v1762_v8 }
 0x14c   :  { %v844_v44 = vadd.f32 %v842_v55, %v830_v10  ;;  %v826_v19 = vadd.f32 %v824_v35, %v812_v0 }
 0x14d   :  { %v2247_v46 = vmul.f32 %v598_v18, %v1936_v47  ;;  %v606_v60 = vmul.f32 %v604_v27, %v1936_v47  ;;  %v761_v47 = vpop.permute.xlu0 %760 }
 0x14e   :  { %961 = vmatpush.msra.mxu0 %v844_v44  ;;  %1068 = vmatpush.msra.mxu2 %v844_v44 }
 0x14f   :  { %1069 = vmatpush.msra.mxu3 %v844_v44  ;;  %v815_v61 = vpop.permute.xlu1 %814 }
 0x150   :  { %v821_v52 = vmul.f32 %v815_v61, %v2034_v20  ;;  %v827_v54 = vmul.f32 %v815_v61, %v1813_v4  ;;  %v767_v20 = vmul.f32 %v761_v47, %v2521_v9  ;;  %v773_v4 = vmul.f32 %v761_v47, %v2519_v37 }
 0x152   :  { %v591_v45 = vpop.permute.xlu2 %590  ;;  %v823_v24 = vmul.f32 %v821_v52, %v2188_v1  ;;  %v829_v49 = vmul.f32 %v827_v54, %v2188_v1 }
 0x153   :  { %v597_v22 = vmul.f32 %v591_v45, %v2518_v5  ;;  %v603_v62 = vmul.f32 %v591_v45, %v2519_v37 }
 0x154   :  { %v843_v3 = vadd.f32 %v841_v21, %v829_v49 }
 0x155   :  { %v2257_v11 = vmul.f32 %v597_v22, %v2520_v7  ;;  %v605_v57 = vmul.f32 %v603_v62, %v2520_v7  ;;  %v2526_v62 = vld [vmem:[#allocation32_spill] sm:$0xff] }
 0x156   :  { %962 = vmatpush.msra.mxu0 %v843_v3  ;;  %1070 = vmatpush.msra.mxu2 %v843_v3 }
 0x157   :  { %v619_v12 = vadd.f32 %v2114_v17, %v605_v57  ;;  %1071 = vmatpush.msra.mxu3 %v843_v3  ;;  %v2527_v57 = vld [vmem:[#allocation19_spill] sm:$0xff]  ;;  %v2528_v3 = vld [vmem:[#allocation16_spill] sm:$0xff] }
 0x158   :  { %v613_v1 = vpop.permute.xlu1 %612  ;;  %963 = vmatpush.msra.mxu0 %v826_v19  ;;  %1072 = vmatpush.msra.mxu2 %v826_v19 }
 0x159   :  { %v775_v16 = vmul.f32 %v773_v4, %v619_v12  ;;  %v2263_v41 = vmul.f32 %v767_v20, %v619_v12  ;;  %v616_v31 = vmul.f32 %v613_v1, %v2522_v53  ;;  %v622_v40 = vmul.f32 %v613_v1, %v2523_v15  ;;  %1073 = vmatpush.msra.mxu3 %v826_v19  ;;  %v2530_v4 = vld [vmem:[#allocation21_spill] sm:$0xff] }
 0x15b   :  { %v765_v28 = vpop.permute.xlu2 %764  ;;  %v789_v29 = vadd.f32 %v2130_v13, %v775_v16  ;;  %v618_v0 = vmul.f32 %v616_v31, %v2524_v51  ;;  %v624_v17 = vmul.f32 %v622_v40, %v2524_v51 }
 0x15c   :  { %v768_v21 = vmul.f32 %v765_v28, %v2522_v53  ;;  %v774_v33 = vmul.f32 %v765_v28, %v1762_v8  ;;  %v2531_v53 = vld [vmem:[#allocation29_spill] sm:$0xff]  ;;  %v2532_v28 = vld [vmem:[#allocation23_spill] sm:$0xff] }
 0x15d   :  { %v620_v6 = vadd.f32 %v618_v0, %v606_v60  ;;  %v638_v25 = vadd.f32 %v2205_v34, %v624_v17  ;;  %v2533_v0 = vld [vmem:[#allocation20_spill] sm:$0xff] }
 0x15f   :  { %v2273_v43 = vmul.f32 %v768_v21, %v620_v6  ;;  %v776_v32 = vmul.f32 %v774_v33, %v620_v6  ;;  %v2534_v33 = vld [vmem:[#allocation25_spill] sm:$0xff] }
 0x161   :  { %v797_v55 = vpop.permute.xlu1 %796 }
 0x162   :  { %v803_v35 = vmul.f32 %v797_v55, %v1992_v42  ;;  %v809_v10 = vmul.f32 %v797_v55, %v2073_v38 }
 0x164   :  { %v703_v13 = vpop.permute.xlu2 %702  ;;  %v805_v18 = vmul.f32 %v803_v35, %v2190_v23  ;;  %v811_v27 = vmul.f32 %v809_v10, %v2190_v23  ;;  %v2309_v10 = vld [vmem:[#allocation3 + $0x8] sm:$0xff] }
 0x165   :  { %v706_v44 = vmul.f32 %v703_v13, %v2126_v56  ;;  %v1067_v13 = vmul.f32 -1.442695, %v2309_v10 }
 0x166   :  { %v825_v60 = vadd.f32 %v823_v24, %v811_v27  ;;  %v807_v34 = vadd.f32 %v805_v18, %v2132_v39 }
 0x167   :  { %v708_v8 = vmul.f32 %v706_v44, %v2142_v50  ;;  %1216 = vpow2.f32 %v1067_v13 }
 0x168   :  { %964 = vmatpush.msra.mxu0 %v825_v60  ;;  %1074 = vmatpush.msra.mxu2 %v825_v60 }
 0x169   :  { %v2283_v19 = vadd.f32 %v708_v8, %v2222_v48  ;;  %1075 = vmatpush.msra.mxu3 %v825_v60  ;;  %v743_v48 = vpop.permute.xlu0 %742  ;;  %v2536_v8 = vld [vmem:[#allocation30_spill] sm:$0xff] }
 0x16a   :  { %v783_v42 = vpop.permute.xlu1 %782  ;;  %v749_v35 = vmul.f32 %v743_v48, %v2518_v5 }
 0x16b   :  { %v786_v38 = vmul.f32 %v783_v42, %v2118_v58  ;;  %v792_v61 = vmul.f32 %v783_v42, %v2523_v15  ;;  %v2525_v58 = vld [vmem:[#allocation17_spill] sm:$0xff] }
 0x16c   :  { %v699_v52 = vpop.permute.xlu2 %698 }
 0x16d   :  { %v705_v23 = vmul.f32 %v699_v52, %v2194_v63  ;;  %v788_v54 = vmul.f32 %v786_v38, %v638_v25  ;;  %v794_v45 = vmul.f32 %v792_v61, %v638_v25 }
 0x16f   :  { %v707_v50 = vmul.f32 %v705_v23, %v2207_v2  ;;  %v808_v39 = vadd.f32 %v2237_v36, %v794_v45  ;;  %v790_v24 = vadd.f32 %v788_v54, %v776_v32  ;;  %v2535_v32 = vld [vmem:[#allocation18_spill] sm:$0xff] }
 0x171   :  { %v709_v49 = vadd.f32 %v707_v50, %v2231_v26  ;;  %965 = vmatpush.msra.mxu0 %v808_v39  ;;  %1076 = vmatpush.msra.mxu2 %v808_v39  ;;  %v2529_v26 = vld [vmem:[#allocation34_spill] sm:$0xff]  ;;  %v725_v40 = vpop.permute.xlu0 %724  ;;  %v2537_v50 = vld [vmem:[#allocation33_spill] sm:$0xff] }
 0x172   :  { %1077 = vmatpush.msra.mxu3 %v808_v39  ;;  %v737_v18 = vmul.f32 %v725_v40, %v2528_v3 }
 0x173   :  { %v577_v22 = vpop.permute.xlu1 %576  ;;  %966 = vmatpush.msra.mxu0 %v807_v34  ;;  %1078 = vmatpush.msra.mxu2 %v807_v34 }
 0x174   :  { %v580_v37 = vmul.f32 %v577_v22, %v2525_v58  ;;  %v586_v47 = vmul.f32 %v577_v22, %v2526_v62  ;;  %1079 = vmatpush.msra.mxu3 %v807_v34  ;;  %v2315_v34 = vld [vmem:[#allocation3] sm:$0xff]  ;;  %v2539_v22 = vld [vmem:[#allocation35_spill] sm:$0xff] }
 0x175   :  { %v555_v7 = vpop.permute.xlu2 %554  ;;  %967 = vmatpush.msra.mxu0 %v790_v24  ;;  %1080 = vmatpush.msra.mxu2 %v790_v24  ;;  %v1066_v42 = vmul.f32 -1.442695, %v2315_v34 }
 0x176   :  { %v561_v2 = vmul.f32 %v555_v7, %v2527_v57  ;;  %v567_v36 = vmul.f32 %v555_v7, %v2528_v3  ;;  %v582_v9 = vmul.f32 %v580_v37, %v2529_v26  ;;  %v588_v20 = vmul.f32 %v586_v47, %v2529_v26  ;;  %1081 = vmatpush.msra.mxu3 %v790_v24  ;;  %v2538_v24 = vld [vmem:[#allocation27_spill] sm:$0xff]  ;;  %v1217_v57 = vpop.eup %1216 }
 0x177   :  { %968 = vmatpush.msra.mxu0 %v789_v29  ;;  %1082 = vmatpush.msra.mxu2 %v789_v29  ;;  %1218 = vpow2.f32 %v1066_v42 }
 0x178   :  { %v563_v12 = vmul.f32 %v561_v2, %v2530_v4  ;;  %v569_v1 = vmul.f32 %v567_v36, %v2530_v4  ;;  %1083 = vmatpush.msra.mxu3 %v789_v29  ;;  %v602_v16 = vadd.f32 %v2247_v46, %v588_v20  ;;  %v755_v29 = vmul.f32 %v743_v48, %v2533_v0 }
 0x179   :  { %v731_v46 = vmul.f32 %v725_v40, %v2532_v28  ;;  %v2329_v20 = vadd.f32 1.0, %v1217_v57  ;;  %v927_v57 = vld [vmem:[#allocation9 + $0x30] sm:$0xff] }
 0x17a   :  { %v565_v31 = vadd.f32 %v563_v12, %v2531_v53 }
 0x17b   :  { %v573_v15 = vpop.permute.xlu1 %572  ;;  %1220 = vrcp.f32 %v2329_v20  ;;  %vm891_vm14 = vweird.f32 %v2329_v20 }
 0x17c   :  { %v579_v51 = vmul.f32 %v573_v15, %v2532_v28  ;;  %v585_v17 = vmul.f32 %v573_v15, %v2533_v0  ;;  %v2540_v28 = vld [vmem:[#allocation24_spill] sm:$0xff] }
 0x17e   :  { %v547_v21 = vpop.permute.xlu2 %546  ;;  %v581_v6 = vmul.f32 %v579_v51, %v2534_v33  ;;  %v587_v25 = vmul.f32 %v585_v17, %v2534_v33  ;;  %v922_v33 = vld [vmem:[#allocation9 + $0x8] sm:$0xff] }
 0x17f   :  { %v550_v55 = vmul.f32 %v547_v21, %v2535_v32 }
 0x180   :  { %v583_v27 = vadd.f32 %v581_v6, %v569_v1  ;;  %v601_v44 = vadd.f32 %v2257_v11, %v587_v25 }
 0x181   :  { %v552_v60 = vmul.f32 %v550_v55, %v2536_v8  ;;  %v924_v8 = vld [vmem:[#allocation9 + $0x18] sm:$0xff] }
 0x182   :  { %v757_v5 = vmul.f32 %v755_v29, %v601_v44  ;;  %v739_v38 = vmul.f32 %v737_v18, %v583_v27  ;;  %v751_v61 = vmul.f32 %v749_v35, %v601_v44  ;;  %v733_v52 = vmul.f32 %v731_v46, %v583_v27 }
 0x183   :  { %v897_v18 = vand.u32 2147483648, %v2329_v20  ;;  %v895_v44 = vand.u32 2147483647, %v2329_v20 }
 0x184   :  { %v559_v23 = vpop.permute.xlu1 %558  ;;  %v771_v54 = vadd.f32 %v2263_v41, %v757_v5  ;;  %v2319_v45 = vadd.f32 %v751_v61, %v739_v38  ;;  %v1219_v41 = vpop.eup %1218 }
 0x185   :  { %v562_v39 = vmul.f32 %v559_v23, %v2537_v50  ;;  %v568_v11 = vmul.f32 %v559_v23, %v2538_v24  ;;  %v2333_v53 = vadd.f32 1.0, %v1219_v41  ;;  %v898_v61 = vor.u32 1.1754944e-38, %v897_v18 }
 0x186   :  { %vm896_vm4 = vcmp.eq.f32.partialorder %v895_v44, 8.507059e+37 }
 0x187   :  { %v851_v48 = vpop.permute.xlu2 %850  ;;  %v564_v37 = vmul.f32 %v562_v39, %v2539_v22  ;;  %v570_v47 = vmul.f32 %v568_v11, %v2539_v22  ;;  %1222 = vrcp.f32 %v2333_v53  ;;  %vm876_vm5 = vweird.f32 %v2333_v53 }
 0x188   :  { %v857_v7 = vmul.f32 %v851_v48, %v2194_v63  ;;  %v880_v5 = vand.u32 2147483647, %v2333_v53 }
 0x189   :  { %v584_v3 = vadd.f32 %v582_v9, %v570_v47  ;;  %v2326_v36 = vadd.f32 %v564_v37, %v552_v60  ;;  %v882_v60 = vand.u32 2147483648, %v2333_v53  ;;  %v921_v37 = vld [vmem:[#allocation9] sm:$0xff]  ;;  %v923_v47 = vld [vmem:[#allocation9 + $0x10] sm:$0xff] }
 0x18a   :  { %v859_v2 = vmul.f32 %v857_v7, %v709_v49  ;;  %vm881_vm2 = vcmp.eq.f32.partialorder %v880_v5, 8.507059e+37  ;;  %v925_v7 = vld [vmem:[#allocation9 + $0x20] sm:$0xff] }
 0x18c   :  { %v861_v26 = vadd.f32 %v859_v2, %v2239_v59 }
 0x18d   :  { %v747_v4 = vpop.permute.xlu1 %746 }
 0x18e   :  { %v750_v12 = vmul.f32 %v747_v4, %v1907_v14  ;;  %v756_v1 = vmul.f32 %v747_v4, %v2526_v62  ;;  %v1221_v14 = vpop.eup %1220 }
 0x18f   :  { %v1223_v0 = vpop.eup %1222  ;;  %vm892_vm9 = vweird.f32 %v1221_v14 }
 0x190   :  { %v713_v15 = vpop.permute.xlu2 %712  ;;  %v752_v40 = vmul.f32 %v750_v12, %v602_v16  ;;  %v758_v63 = vmul.f32 %v756_v1, %v602_v16  ;;  %v872_v21 = vmul.f32 %v1223_v0, %v2333_v53  ;;  %vm877_vm3 = vweird.f32 %v1223_v0  ;;  %vm2352_vm10 = vmor %vm891_vm14, %vm892_vm9 }
 0x191   :  { %v719_v49 = vmul.f32 %v713_v15, %v2540_v28  ;;  %vm878_vm7 = vmor %vm876_vm5, %vm877_vm3 }
 0x192   :  { %v772_v51 = vadd.f32 %v2273_v43, %v758_v63  ;;  %v873_v55 = vsub.f32 1.0, %v872_v21 }
 0x193   :  { %v721_v9 = vmul.f32 %v719_v49, %v565_v31  ;;  %v887_v31 = vmul.f32 %v1221_v14, %v2329_v20 }
 0x194   :  { %969 = vmatpush.msra.mxu0 %v772_v51  ;;  %1084 = vmatpush.msra.mxu2 %v772_v51 }
 0x195   :  { %v2339_v59 = vadd.f32 %v733_v52, %v721_v9  ;;  %1085 = vmatpush.msra.mxu3 %v772_v51  ;;  %v888_v6 = vsub.f32 1.0, %v887_v31 }
 0x196   :  { %v855_v62 = vpop.permute.xlu1 %854  ;;  %970 = vmatpush.msra.mxu0 %v771_v54  ;;  %1086 = vmatpush.msra.mxu2 %v771_v54 }
 0x197   :  { %v858_v16 = vmul.f32 %v855_v62, %v2126_v56  ;;  %1087 = vmatpush.msra.mxu3 %v771_v54  ;;  %v889_v29 = vmul.f32 %v1221_v14, %v888_v6  ;;  %v883_v54 = vor.u32 1.1754944e-38, %v882_v60 }
 0x199   :  { %v860_v17 = vmul.f32 %v858_v16, %v2283_v19  ;;  %v890_v27 = vadd.f32 %v1221_v14, %v889_v29 }
 0x19b   :  { %v862_v43 = vadd.f32 %v860_v17, %v2224_v30  ;;  %v874_v30 = vmul.f32 %v1223_v0, %v873_v55  ;;  %v894_v23 = vsel %vm2352_vm10, %v1221_v14, %v890_v27 }
 0x19d   :  { %1004 = vmatpush.msra.mxu1 %v862_v43  ;;  %v875_v42 = vadd.f32 %v1223_v0, %v874_v30 }
 0x19f   :  { %v729_v25 = vpop.permute.xlu1 %728  ;;  %1005 = vmatpush.msra.mxu1 %v861_v26  ;;  %v879_v39 = vsel %vm878_vm7, %v1223_v0, %v875_v42 }
 0x1a0   :  { %v732_v35 = vmul.f32 %v729_v25, %v2525_v58  ;;  %v738_v56 = vmul.f32 %v729_v25, %v2538_v24  ;;  %1006 = vmatmul.f32.vlgmr.msra.gmra.mxu1 %v922_v33  ;;  %v899_v24 = vsel %vm896_vm4, %v898_v61, %v894_v23  ;;  %v884_v48 = vsel %vm881_vm2, %v883_v54, %v879_v39 }
 0x1a1   :  { %v902_v22 = vmul.f32 %v2309_v10, %v899_v24  ;;  %v928_v10 = vld [vmem:[#allocation9 + $0x38] sm:$0xff] }
 0x1a2   :  { %v734_v46 = vmul.f32 %v732_v35, %v584_v3  ;;  %v740_v19 = vmul.f32 %v738_v56, %v584_v3 }
 0x1a4   :  { %v754_v13 = vadd.f32 %v752_v40, %v740_v19 }
 0x1a6   :  { %971 = vmatpush.msra.mxu0 %v754_v13  ;;  %1088 = vmatpush.msra.mxu2 %v754_v13 }
 0x1a7   :  { %1089 = vmatpush.msra.mxu3 %v754_v13 }
 0x1a8   :  { %v717_v38 = vpop.permute.xlu1 %716  ;;  %972 = vmatpush.msra.mxu0 %v2319_v45  ;;  %1090 = vmatpush.msra.mxu2 %v2319_v45 }
 0x1a9   :  { %v720_v52 = vmul.f32 %v717_v38, %v2535_v32  ;;  %1091 = vmatpush.msra.mxu3 %v2319_v45  ;;  %1009 = vmatmul.f32.gmra.mxu1 %v924_v8  ;;  %v926_v32 = vld [vmem:[#allocation9 + $0x28] sm:$0xff]  ;;  %v901_v45 = vmul.f32 %v2315_v34, %v884_v48 }
 0x1ab   :  { %v722_v50 = vmul.f32 %v720_v52, %v2326_v36 }
 0x1ad   :  { %v736_v11 = vadd.f32 %v734_v46, %v722_v50 }
 0x1af   :  { %973 = vmatpush.msra.mxu0 %v736_v11  ;;  %1092 = vmatpush.msra.mxu2 %v736_v11 }
 0x1b0   :  { %1093 = vmatpush.msra.mxu3 %v736_v11 }
 0x1b1   :  { %974 = vmatpush.msra.mxu0 %v2339_v59  ;;  %1094 = vmatpush.msra.mxu2 %v2339_v59 }
 0x1b2   :  { %1095 = vmatpush.msra.mxu3 %v2339_v59  ;;  %1012 = vmatmul.f32.gmra.mxu1 %v926_v32 }
 0x1b3   :  { %975 = vmatpush.msra.mxu0 %v902_v22  ;;  %1096 = vmatpush.msra.mxu2 %v902_v22 }
 0x1b4   :  { %1097 = vmatpush.msra.mxu3 %v902_v22 }
 0x1b5   :  { %976 = vmatpush.msra.mxu0 %v901_v45  ;;  %1098 = vmatpush.msra.mxu2 %v901_v45 }
 0x1b6   :  { %1099 = vmatpush.msra.mxu3 %v901_v45  ;;  %977 = vmatmul.f32.vlgmr.msra.gmra.mxu0 %v921_v37 }
 0x1b7   :  { %980 = vmatmul.f32.vlgmr.msra.gmra.mxu2 %v923_v47  ;;  %983 = vmatmul.f32.vlgmr.msra.gmra.mxu3 %v925_v7 }
 0x1ba   :  { %1015 = vmatmul.f32.gmra.mxu1 %v928_v10 }
 0x1bf   :  { %986 = vmatmul.f32.gmra.mxu3 %v927_v57 }
 0x21d   :  { %v1007_v34 = vpop.f32.mrf.mxu1 }
 0x226   :  { %v1010_v2 = vpop.f32.mrf.mxu1 }
 0x22f   :  { %v1013_v41 = vpop.f32.mrf.mxu1 }
 0x233   :  { %v978_v3 = vpop.f32.mrf.mxu0 }
 0x234   :  { %v1008_v36 = vadd.f32 %v1007_v34, %v978_v3 }
 0x236   :  { %1019 = vst [vmem:[#allocation11] sm:$0xff] %v1008_v36 }
 0x237   :  { %v1016_v1 = vpop.f32.mrf.mxu1 }
 0x23a   :  { %v981_v26 = vpop.f32.mrf.mxu2  ;;  %v984_v20 = vpop.f32.mrf.mxu3 }
 0x23b   :  { %v1011_v4 = vadd.f32 %v1010_v2, %v981_v26  ;;  %v1014_v12 = vadd.f32 %v1013_v41, %v984_v20 }
 0x23d   :  { %1020 = vst [vmem:[#allocation11 + $0x8] sm:$0xff] %v1011_v4 }
 0x23e   :  { %1021 = vst [vmem:[#allocation11 + $0x10] sm:$0xff] %v1014_v12 }
 0x242   :  { %v987_v53 = vpop.f32.mrf.mxu3 }
 0x243   :  { %v1017_v15 = vadd.f32 %v1016_v1, %v987_v53 }
 0x245   :  { %1022 = vst [vmem:[#allocation11 + $0x18] sm:$0xff] %v1017_v15 }
 0x246   :  { %1035 = dma.vmem_to_hbm [thread:$0]  %s1028_s10, 512, %s1030_s13, [#allocation5], %s1355_s23, %s1355_s23, %s1356_s24  }
 0x247   :  { %1352 = dma.done.wait [#allocation5], 512  }
 0x248   :  { %1353 = vsyncadd [#allocation5], 4294966784 }
 0x249   :  { %1040 = vsyncpa [#allocation4], 1 }
 0x24a   :  { %1041 = vsyncpa [#allocation7], 1 }
 0x24b   :  { %1042 = vsyncpa [#allocation10], 1 }
 0x24c   :  { %1043 = vsyncpa [#allocation5], 1 }

</bundles_post_ra>
